<compile_context>
chip_gen: v7x
topology: tpu7x:2x2x1
jax: 0.10.0
libtpu: 0.0.40
codegen_flags: <defaults>
</compile_context>

<pallas_src>
import functools

import numpy as np
import jax
import jax.numpy as jnp
from jax import lax
from jax.experimental import pallas as pl
from jax.experimental.pallas import tpu as pltpu


# ----------------------------- fused Pallas kernel -----------------------------

def _conv_stack_kernel(x_ref, attr_ref,
                       w1_ref, s1_ref, w2_ref, s2_ref, w3_ref, s3_ref,
                       wfc_ref, wattr_ref, bfc_ref,
                       o_ref, *, T):
    """One block of B_blk batch elements per grid step; all intermediates stay on-chip."""
    M = x_ref.shape[1]            # B_blk * T rows
    B_blk = M // T
    n_out = wfc_ref.shape[1]

    # Per-row time index (rows are ordered batch-major, time-minor).
    row_t = lax.broadcasted_iota(jnp.int32, (M, 1), 0) % T
    first = row_t == 0            # t == 0   rows
    last = row_t == (T - 1)       # t == T-1 rows

    def conv_layer(a, w_ref, s_ref):
        # a: (M, K) bf16 activation.  Build the (M, 3K) im2col in-register: shift the
        # whole block by one row for the t-1 / t+1 taps and mask each element's own
        # boundary rows (this both applies the conv zero-padding in time and prevents
        # adjacent batch elements from bleeding into each other).
        zrow = jnp.zeros((1, a.shape[1]), a.dtype)
        prev = jnp.concatenate([zrow, a[:-1, :]], axis=0)          # row t <- input[t-1]
        prev = jnp.where(first, jnp.zeros((), a.dtype), prev)
        nxt = jnp.concatenate([a[1:, :], zrow], axis=0)            # row t <- input[t+1]
        nxt = jnp.where(last, jnp.zeros((), a.dtype), nxt)
        col = jnp.concatenate([prev, a, nxt], axis=1)              # (M, 3K) bf16
        # Single MXU matmul per layer (taps fused along K), f32 accumulation.
        acc = jnp.dot(col, w_ref[...], preferred_element_type=jnp.float32)
        # BN scale is folded into the banded weights; shift folds conv bias + BN beta.
        return jnp.maximum(acc + s_ref[...], 0.0)

    h = conv_layer(x_ref[0], w1_ref, s1_ref)                       # conv1 + BN + ReLU
    h = conv_layer(h.astype(jnp.bfloat16), w2_ref, s2_ref)         # conv2 + BN + ReLU
    h = conv_layer(h.astype(jnp.bfloat16), w3_ref, s3_ref)         # conv3 -> (M, F3*C3)

    # FC (+ReLU).  Conv features use row-permuted weights (absorbs torch's channel-major
    # flatten); the 3-wide frame_level_note_attribs contribute via broadcast-FMAs.
    y = jnp.dot(h.astype(jnp.bfloat16), wfc_ref[...],
                preferred_element_type=jnp.float32)
    attr = attr_ref[0]                                             # (M, 3) f32
    wa = wattr_ref[...]                                            # (3, n_out) f32
    y = y + (attr[:, 0:1] * wa[0:1, :]
             + attr[:, 1:2] * wa[1:2, :]
             + attr[:, 2:3] * wa[2:3, :])
    y = jnp.maximum(y + bfc_ref[...], 0.0)                         # (M, n_out)

    # Lane-dense store: pack the T time steps of each element along lanes so the store
    # and HBM writeback use T*n_out (=256 here) dense lanes instead of 32/128 masked.
    y3 = y.reshape(B_blk, T, n_out)
    packed = jnp.concatenate([y3[:, t, :] for t in range(T)], axis=-1)
    o_ref[0] = packed
    # TODO(synk): Dropout layers are train-time only; identity in this eval-mode forward.


def conv_stack_forward(pallas_params, x, frame_level_note_attribs, note_attribs,
                       *, target_rows=256):
    """Fused ConvStack forward.  note_attribs is accepted but unused (as in torch)."""
    del note_attribs
    pp = pallas_params
    B, T, F = x.shape
    n_attr = frame_level_note_attribs.shape[-1]
    n_out = pp["wfc"].shape[1]

    # --- batch-blocking policy: aim for M = B_blk*T ~ target_rows (MXU fill), but keep
    # --- at least 2 parallel grid steps when B >= 2 so both v7x TensorCores are used.
    B_blk = max(1, min(B, target_rows // max(T, 1)))
    if B > 1 and pl.cdiv(B, B_blk) == 1:
        B_blk = pl.cdiv(B, 2)
    num_blocks = pl.cdiv(B, B_blk)
    B_pad = num_blocks * B_blk

    xf = x.astype(jnp.bfloat16)
    af = frame_level_note_attribs.astype(jnp.float32)
    if B_pad != B:
        xf = jnp.pad(xf, ((0, B_pad - B), (0, 0), (0, 0)))
        af = jnp.pad(af, ((0, B_pad - B), (0, 0), (0, 0)))
    # Lay out blocks as (num_blocks, B_blk*T, feat) -- free XLA reshapes.
    xf = xf.reshape(num_blocks, B_blk * T, F)
    af = af.reshape(num_blocks, B_blk * T, n_attr)

    def wspec(a):  # whole-array constant-index block: resident, no per-step re-DMA
        return pl.BlockSpec(a.shape, lambda i: (0, 0))

    grid_spec = pltpu.PrefetchScalarGridSpec(
        num_scalar_prefetch=0,
        grid=(num_blocks,),
        in_specs=[
            pl.BlockSpec((1, B_blk * T, F), lambda i: (i, 0, 0)),
            pl.BlockSpec((1, B_blk * T, n_attr), lambda i: (i, 0, 0)),
            wspec(pp["w1"]), wspec(pp["s1"]),
            wspec(pp["w2"]), wspec(pp["s2"]),
            wspec(pp["w3"]), wspec(pp["s3"]),
            wspec(pp["wfc"]), wspec(pp["wattr"]), wspec(pp["bfc"]),
        ],
        out_specs=pl.BlockSpec((1, B_blk, T * n_out), lambda i: (i, 0, 0)),
    )

    kernel = functools.partial(_conv_stack_kernel, T=T)
    out = pl.pallas_call(
        kernel,
        out_shape=jax.ShapeDtypeStruct((num_blocks, B_blk, T * n_out), jnp.float32),
        grid_spec=grid_spec,
        compiler_params=pltpu.CompilerParams(
            dimension_semantics=("parallel",),
            vmem_limit_bytes=64 * 1024 * 1024),
    )(xf, af, pp["w1"], pp["s1"], pp["w2"], pp["s2"], pp["w3"], pp["s3"],
      pp["wfc"], pp["wattr"], pp["bfc"])

    out = out.reshape(B_pad, T, n_out)          # un-pack lane-dense output (free reshape)
    return out[:B]


# --------------------- host-side (one-time) parameter folding -------------------

def prepare_pallas_params(params, input_size):
    """Fold BN into tap-fused banded matmul weights, permute FC rows, split attrib cols."""
    banded = []
    f_in = input_size
    last_cout = None
    for (w, scale, shift, stride) in params["conv"]:
        k, _, cin, cout = w.shape
        p = k // 2
        f_out = (f_in + 2 * p - k) // stride + 1
        w_np = (np.asarray(w, np.float32)
                * np.asarray(scale, np.float32)[None, None, None, :])
        Wk = np.zeros((k, f_in * cin, f_out * cout), np.float32)
        for kh in range(k):
            for kw in range(k):
                for fo in range(f_out):
                    f = stride * fo + kw - p
                    if 0 <= f < f_in:
                        Wk[kh, f * cin:(f + 1) * cin,
                           fo * cout:(fo + 1) * cout] = w_np[kh, kw]
        # Fuse the k time taps along the contraction dim: rows [kh*K:(kh+1)*K] <-> tap kh,
        # matching the kernel's im2col lane order concat([prev, cur, next]).
        W_fused = Wk.reshape(k * f_in * cin, f_out * cout)
        shift_row = np.tile(np.asarray(shift, np.float32), f_out).reshape(1, f_out * cout)
        banded.append((jnp.asarray(W_fused, jnp.bfloat16), jnp.asarray(shift_row)))
        f_in, last_cout = f_out, cout

    w_fc, b_fc = params["fc"]
    w_fc = np.asarray(w_fc, np.float32)
    b_fc = np.asarray(b_fc, np.float32)
    F3, C3 = f_in, last_cout
    n_out = w_fc.shape[1]
    n_conv = C3 * F3
    # torch flatten order is channel-major (c*F3 + f); the kernel produces freq-major
    # (f*C3 + c) -> permute FC weight rows once instead of transposing activations.
    w_conv = w_fc[:n_conv].reshape(C3, F3, n_out).transpose(1, 0, 2).reshape(F3 * C3, n_out)
    w_attr = w_fc[n_conv:]
    return {
        "w1": banded[0][0], "s1": banded[0][1],
        "w2": banded[1][0], "s2": banded[1][1],
        "w3": banded[2][0], "s3": banded[2][1],
        "wfc": jnp.asarray(w_conv, jnp.bfloat16),
        "wattr": jnp.asarray(w_attr),
        "bfc": jnp.asarray(b_fc.reshape(1, n_out)),
    }


# --------------------------- pure-JAX reference ---------------------------------

def conv_stack_reference(params, x, frame_level_note_attribs):
    h = x[..., None].astype(jnp.float32)
    for (w, scale, shift, stride) in params["conv"]:
        k = w.shape[0]
        p = k // 2
        y = lax.conv_general_dilated(
            h, w, window_strides=(1, stride), padding=[(p, p), (p, p)],
            dimension_numbers=("NHWC", "HWIO", "NHWC"),
            precision=lax.Precision.HIGHEST)
        h = jnp.maximum(y * scale + shift, 0.0)
    B, T, F3, C3 = h.shape
    h = jnp.transpose(h, (0, 1, 3, 2)).reshape(B, T, C3 * F3)
    h = jnp.concatenate([h, frame_level_note_attribs.astype(jnp.float32)], axis=-1)
    w_fc, b_fc = params["fc"]
    y = jnp.einsum("btk,kn->btn", h, w_fc, precision=lax.Precision.HIGHEST) + b_fc
    return jnp.maximum(y, 0.0)


# ------------------------------- params ----------------------------------------

def init_params(key, input_size, output_size, k, ch1, s1, ch2, s2, ch3, s3):
    keys = jax.random.split(key, 8)
    convs = []
    specs = [(1, ch1, s1), (ch1, ch2, s2), (ch2, ch3, s3)]
    for i, (cin, cout, stride) in enumerate(specs):
        w = 0.2 * jax.random.normal(keys[2 * i], (k, k, cin, cout), jnp.float32)
        bias = 0.1 * jax.random.normal(keys[2 * i + 1], (cout,), jnp.float32)
        # deterministic BatchNorm (eval-mode) parameters
        gamma = 1.0 + 0.05 * jnp.arange(cout, dtype=jnp.float32)
        beta = 0.02 * jnp.arange(cout, dtype=jnp.float32)
        running_mean = 0.01 * jnp.arange(cout, dtype=jnp.float32)
        running_var = 1.0 + 0.03 * jnp.arange(cout, dtype=jnp.float32)
        eps = 1e-5
        scale = gamma / jnp.sqrt(running_var + eps)
        shift = beta + (bias - running_mean) * scale
        convs.append((w, scale, shift, stride))
    fc_in = ch3 * (input_size // (s1 * s2 * s3)) + 3
    w_fc = 0.2 * jax.random.normal(keys[6], (fc_in, output_size), jnp.float32)
    b_fc = 0.1 * jax.random.normal(keys[7], (output_size,), jnp.float32)
    return {"conv": convs, "fc": (w_fc, b_fc)}


# -------------------------------- main ------------------------------------------

if __name__ == "__main__":
    # ConvStack hyper-params
    input_size, output_size = 16, 32
    conv_kernel_size = 3
    conv1_out_ch, conv1_stride = 4, 1
    conv2_out_ch, conv2_stride = 8, 2
    conv3_out_ch, conv3_stride = 8, 2
    # activation = "ReLU", conv_dropout = fc_dropout = 0.1 (identity in eval)

    B, T = 2, 8
    key = jax.random.PRNGKey(0)
    kx, kf, kn, kp = jax.random.split(key, 4)
    x = jax.random.normal(kx, (B, T, input_size), jnp.float32)
    frame_level_note_attribs = jax.random.normal(kf, (B, T, 3), jnp.float32)
    note_attribs = jax.random.normal(kn, (B, T, 3), jnp.float32)  # unused by forward

    params = init_params(kp, input_size, output_size, conv_kernel_size,
                         conv1_out_ch, conv1_stride, conv2_out_ch, conv2_stride,
                         conv3_out_ch, conv3_stride)
    pallas_params = prepare_pallas_params(params, input_size)

    out = conv_stack_forward(pallas_params, x, frame_level_note_attribs, note_attribs)
    out = jax.block_until_ready(out)

    ref = conv_stack_reference(params, x, frame_level_note_attribs)
    assert out.shape == (B, T, output_size), out.shape
    assert bool(jnp.all(jnp.isfinite(out)))
    max_err = float(jnp.max(jnp.abs(out - ref)))
    assert bool(jnp.allclose(out, ref, rtol=5e-2, atol=5e-2)), max_err
    print("KERNEL_OK")
</pallas_src>

<mosaic_0001>
module attributes {stable_mosaic.version = 11 : i64} {
  func.func @_conv_stack_kernel(%arg0: i32, %arg1: memref<1x8x16xbf16, #tpu.memory_space<vmem>>, %arg2: memref<1x8x3xf32, #tpu.memory_space<vmem>>, %arg3: memref<48x64xbf16, #tpu.memory_space<vmem>>, %arg4: memref<1x64xf32, #tpu.memory_space<vmem>>, %arg5: memref<192x64xbf16, #tpu.memory_space<vmem>>, %arg6: memref<1x64xf32, #tpu.memory_space<vmem>>, %arg7: memref<192x32xbf16, #tpu.memory_space<vmem>>, %arg8: memref<1x32xf32, #tpu.memory_space<vmem>>, %arg9: memref<32x32xbf16, #tpu.memory_space<vmem>>, %arg10: memref<3x32xf32, #tpu.memory_space<vmem>>, %arg11: memref<1x32xf32, #tpu.memory_space<vmem>>, %arg12: memref<1x1x256xf32, #tpu.memory_space<vmem>>) attributes {dimension_semantics = [#tpu.dimension_semantics<parallel>], iteration_bounds = array<i64: 2>, scalar_prefetch = 0 : i64, scratch_operands = 0 : i64, tpu.core_type = #tpu.core_type<tc>, window_params = [{transform_indices = @transform_0, window_bounds = array<i64: 1, 8, 16>}, {transform_indices = @transform_1, window_bounds = array<i64: 1, 8, 3>}, {pipeline_mode = #tpu.pipeline_mode<synchronous>, transform_indices = @transform_2, window_bounds = array<i64: 48, 64>}, {pipeline_mode = #tpu.pipeline_mode<synchronous>, transform_indices = @transform_3, window_bounds = array<i64: 1, 64>}, {pipeline_mode = #tpu.pipeline_mode<synchronous>, transform_indices = @transform_4, window_bounds = array<i64: 192, 64>}, {pipeline_mode = #tpu.pipeline_mode<synchronous>, transform_indices = @transform_5, window_bounds = array<i64: 1, 64>}, {pipeline_mode = #tpu.pipeline_mode<synchronous>, transform_indices = @transform_6, window_bounds = array<i64: 192, 32>}, {pipeline_mode = #tpu.pipeline_mode<synchronous>, transform_indices = @transform_7, window_bounds = array<i64: 1, 32>}, {pipeline_mode = #tpu.pipeline_mode<synchronous>, transform_indices = @transform_8, window_bounds = array<i64: 32, 32>}, {pipeline_mode = #tpu.pipeline_mode<synchronous>, transform_indices = @transform_9, window_bounds = array<i64: 3, 32>}, {pipeline_mode = #tpu.pipeline_mode<synchronous>, transform_indices = @transform_10, window_bounds = array<i64: 1, 32>}, {transform_indices = @transform_11, window_bounds = array<i64: 1, 1, 256>}]} {
    %0 = tpu.iota {dimensions = array<i32: 0>} : vector<8x1xi32>
    %c8_i32 = arith.constant 8 : i32
    %c0_i32 = arith.constant 0 : i32
    %1 = arith.cmpi eq, %c8_i32, %c0_i32 : i32
    %c1_i32 = arith.constant 1 : i32
    %2 = arith.select %1, %c1_i32, %c8_i32 : i32
    %3 = vector.broadcast %2 : i32 to vector<8x1xi32>
    %4 = arith.remsi %0, %3 : vector<8x1xi32>
    %c0_i32_0 = arith.constant 0 : i32
    %5 = vector.broadcast %c0_i32_0 : i32 to vector<8x1xi32>
    %6 = arith.cmpi ne, %4, %5 : vector<8x1xi32>
    %c0_i32_1 = arith.constant 0 : i32
    %7 = vector.broadcast %c0_i32_1 : i32 to vector<8x1xi32>
    %8 = arith.cmpi slt, %4, %7 : vector<8x1xi32>
    %c0_i32_2 = arith.constant 0 : i32
    %9 = arith.cmpi slt, %2, %c0_i32_2 : i32
    %10 = vector.broadcast %9 : i1 to vector<8x1xi1>
    %11 = vector.broadcast %10 : vector<8x1xi1> to vector<8x1xi1>
    %12 = arith.xori %8, %11 : vector<8x1xi1>
    %13 = arith.andi %12, %6 : vector<8x1xi1>
    %14 = vector.broadcast %2 : i32 to vector<8x1xi32>
    %15 = arith.addi %4, %14 : vector<8x1xi32>
    %16 = arith.select %13, %15, %4 : vector<8x1xi1>, vector<8x1xi32>
    %c0_i32_3 = arith.constant 0 : i32
    %17 = vector.broadcast %c0_i32_3 : i32 to vector<8x1xi32>
    %18 = arith.cmpi eq, %16, %17 : vector<8x1xi32>
    %c7_i32 = arith.constant 7 : i32
    %19 = vector.broadcast %c7_i32 : i32 to vector<8x1xi32>
    %20 = arith.cmpi eq, %16, %19 : vector<8x1xi32>
    %c0 = arith.constant 0 : index
    %c0_4 = arith.constant 0 : index
    %c0_5 = arith.constant 0 : index
    %21 = vector.load %arg1[%c0, %c0_4, %c0_5] : memref<1x8x16xbf16, #tpu.memory_space<vmem>>, vector<1x8x16xbf16>
    %22 = vector.shape_cast %21 : vector<1x8x16xbf16> to vector<8x16xbf16>
    %cst = arith.constant 0.000000e+00 : bf16
    %23 = vector.broadcast %cst : bf16 to vector<1x16xbf16>
    %24 = vector.extract_strided_slice %22 {offsets = [0, 0], sizes = [7, 16], strides = [1, 1]} : vector<8x16xbf16> to vector<7x16xbf16>
    %25 = tpu.concatenate %23, %24 in 0 : vector<1x16xbf16>, vector<7x16xbf16> -> vector<8x16xbf16>
    %cst_6 = arith.constant 0.000000e+00 : bf16
    %26 = vector.shape_cast %18 : vector<8x1xi1> to vector<8x1xi1>
    %27 = vector.broadcast %26 : vector<8x1xi1> to vector<8x16xi1>
    %28 = vector.broadcast %cst_6 : bf16 to vector<8x16xbf16>
    %29 = arith.select %27, %28, %25 : vector<8x16xi1>, vector<8x16xbf16>
    %30 = vector.extract_strided_slice %22 {offsets = [1, 0], sizes = [7, 16], strides = [1, 1]} : vector<8x16xbf16> to vector<7x16xbf16>
    %31 = tpu.concatenate %30, %23 in 0 : vector<7x16xbf16>, vector<1x16xbf16> -> vector<8x16xbf16>
    %cst_7 = arith.constant 0.000000e+00 : bf16
    %32 = vector.shape_cast %20 : vector<8x1xi1> to vector<8x1xi1>
    %33 = vector.broadcast %32 : vector<8x1xi1> to vector<8x16xi1>
    %34 = vector.broadcast %cst_7 : bf16 to vector<8x16xbf16>
    %35 = arith.select %33, %34, %31 : vector<8x16xi1>, vector<8x16xbf16>
    %36 = tpu.concatenate %29, %22, %35 in 1 : vector<8x16xbf16>, vector<8x16xbf16>, vector<8x16xbf16> -> vector<8x48xbf16>
    %c0_8 = arith.constant 0 : index
    %c0_9 = arith.constant 0 : index
    %37 = vector.load %arg3[%c0_8, %c0_9] : memref<48x64xbf16, #tpu.memory_space<vmem>>, vector<48x64xbf16>
    %cst_10 = arith.constant dense<0.000000e+00> : vector<8x64xf32>
    %38 = tpu.matmul %36, %37, %cst_10 {dimension_numbers = #tpu.dot_dimension_numbers<[1], [0], [0], [1], [0, 0, 1, 1], [], []>} : vector<8x48xbf16>, vector<48x64xbf16>, vector<8x64xf32> -> vector<8x64xf32>
    %c0_11 = arith.constant 0 : index
    %c0_12 = arith.constant 0 : index
    %39 = vector.load %arg4[%c0_11, %c0_12] : memref<1x64xf32, #tpu.memory_space<vmem>>, vector<1x64xf32>
    %40 = vector.broadcast %39 : vector<1x64xf32> to vector<8x64xf32>
    %41 = arith.addf %38, %40 : vector<8x64xf32>
    %cst_13 = arith.constant 0.000000e+00 : f32
    %42 = vector.broadcast %cst_13 : f32 to vector<8x64xf32>
    %43 = arith.maximumf %41, %42 : vector<8x64xf32>
    %44 = arith.truncf %43 : vector<8x64xf32> to vector<8x64xbf16>
    %cst_14 = arith.constant 0.000000e+00 : bf16
    %45 = vector.broadcast %cst_14 : bf16 to vector<1x64xbf16>
    %46 = vector.extract_strided_slice %44 {offsets = [0, 0], sizes = [7, 64], strides = [1, 1]} : vector<8x64xbf16> to vector<7x64xbf16>
    %47 = tpu.concatenate %45, %46 in 0 : vector<1x64xbf16>, vector<7x64xbf16> -> vector<8x64xbf16>
    %cst_15 = arith.constant 0.000000e+00 : bf16
    %48 = vector.shape_cast %18 : vector<8x1xi1> to vector<8x1xi1>
    %49 = vector.broadcast %48 : vector<8x1xi1> to vector<8x64xi1>
    %50 = vector.broadcast %cst_15 : bf16 to vector<8x64xbf16>
    %51 = arith.select %49, %50, %47 : vector<8x64xi1>, vector<8x64xbf16>
    %52 = vector.extract_strided_slice %44 {offsets = [1, 0], sizes = [7, 64], strides = [1, 1]} : vector<8x64xbf16> to vector<7x64xbf16>
    %53 = tpu.concatenate %52, %45 in 0 : vector<7x64xbf16>, vector<1x64xbf16> -> vector<8x64xbf16>
    %cst_16 = arith.constant 0.000000e+00 : bf16
    %54 = vector.shape_cast %20 : vector<8x1xi1> to vector<8x1xi1>
    %55 = vector.broadcast %54 : vector<8x1xi1> to vector<8x64xi1>
    %56 = vector.broadcast %cst_16 : bf16 to vector<8x64xbf16>
    %57 = arith.select %55, %56, %53 : vector<8x64xi1>, vector<8x64xbf16>
    %58 = tpu.concatenate %51, %44, %57 in 1 : vector<8x64xbf16>, vector<8x64xbf16>, vector<8x64xbf16> -> vector<8x192xbf16>
    %c0_17 = arith.constant 0 : index
    %c0_18 = arith.constant 0 : index
    %59 = vector.load %arg5[%c0_17, %c0_18] : memref<192x64xbf16, #tpu.memory_space<vmem>>, vector<192x64xbf16>
    %cst_19 = arith.constant dense<0.000000e+00> : vector<8x64xf32>
    %60 = tpu.matmul %58, %59, %cst_19 {dimension_numbers = #tpu.dot_dimension_numbers<[1], [0], [0], [1], [0, 0, 1, 1], [], []>} : vector<8x192xbf16>, vector<192x64xbf16>, vector<8x64xf32> -> vector<8x64xf32>
    %c0_20 = arith.constant 0 : index
    %c0_21 = arith.constant 0 : index
    %61 = vector.load %arg6[%c0_20, %c0_21] : memref<1x64xf32, #tpu.memory_space<vmem>>, vector<1x64xf32>
    %62 = vector.broadcast %61 : vector<1x64xf32> to vector<8x64xf32>
    %63 = arith.addf %60, %62 : vector<8x64xf32>
    %cst_22 = arith.constant 0.000000e+00 : f32
    %64 = vector.broadcast %cst_22 : f32 to vector<8x64xf32>
    %65 = arith.maximumf %63, %64 : vector<8x64xf32>
    %66 = arith.truncf %65 : vector<8x64xf32> to vector<8x64xbf16>
    %cst_23 = arith.constant 0.000000e+00 : bf16
    %67 = vector.broadcast %cst_23 : bf16 to vector<1x64xbf16>
    %68 = vector.extract_strided_slice %66 {offsets = [0, 0], sizes = [7, 64], strides = [1, 1]} : vector<8x64xbf16> to vector<7x64xbf16>
    %69 = tpu.concatenate %67, %68 in 0 : vector<1x64xbf16>, vector<7x64xbf16> -> vector<8x64xbf16>
    %cst_24 = arith.constant 0.000000e+00 : bf16
    %70 = vector.shape_cast %18 : vector<8x1xi1> to vector<8x1xi1>
    %71 = vector.broadcast %70 : vector<8x1xi1> to vector<8x64xi1>
    %72 = vector.broadcast %cst_24 : bf16 to vector<8x64xbf16>
    %73 = arith.select %71, %72, %69 : vector<8x64xi1>, vector<8x64xbf16>
    %74 = vector.extract_strided_slice %66 {offsets = [1, 0], sizes = [7, 64], strides = [1, 1]} : vector<8x64xbf16> to vector<7x64xbf16>
    %75 = tpu.concatenate %74, %67 in 0 : vector<7x64xbf16>, vector<1x64xbf16> -> vector<8x64xbf16>
    %cst_25 = arith.constant 0.000000e+00 : bf16
    %76 = vector.shape_cast %20 : vector<8x1xi1> to vector<8x1xi1>
    %77 = vector.broadcast %76 : vector<8x1xi1> to vector<8x64xi1>
    %78 = vector.broadcast %cst_25 : bf16 to vector<8x64xbf16>
    %79 = arith.select %77, %78, %75 : vector<8x64xi1>, vector<8x64xbf16>
    %80 = tpu.concatenate %73, %66, %79 in 1 : vector<8x64xbf16>, vector<8x64xbf16>, vector<8x64xbf16> -> vector<8x192xbf16>
    %c0_26 = arith.constant 0 : index
    %c0_27 = arith.constant 0 : index
    %81 = vector.load %arg7[%c0_26, %c0_27] : memref<192x32xbf16, #tpu.memory_space<vmem>>, vector<192x32xbf16>
    %cst_28 = arith.constant dense<0.000000e+00> : vector<8x32xf32>
    %82 = tpu.matmul %80, %81, %cst_28 {dimension_numbers = #tpu.dot_dimension_numbers<[1], [0], [0], [1], [0, 0, 1, 1], [], []>} : vector<8x192xbf16>, vector<192x32xbf16>, vector<8x32xf32> -> vector<8x32xf32>
    %c0_29 = arith.constant 0 : index
    %c0_30 = arith.constant 0 : index
    %83 = vector.load %arg8[%c0_29, %c0_30] : memref<1x32xf32, #tpu.memory_space<vmem>>, vector<1x32xf32>
    %84 = vector.broadcast %83 : vector<1x32xf32> to vector<8x32xf32>
    %85 = arith.addf %82, %84 : vector<8x32xf32>
    %cst_31 = arith.constant 0.000000e+00 : f32
    %86 = vector.broadcast %cst_31 : f32 to vector<8x32xf32>
    %87 = arith.maximumf %85, %86 : vector<8x32xf32>
    %88 = arith.truncf %87 : vector<8x32xf32> to vector<8x32xbf16>
    %c0_32 = arith.constant 0 : index
    %c0_33 = arith.constant 0 : index
    %89 = vector.load %arg9[%c0_32, %c0_33] : memref<32x32xbf16, #tpu.memory_space<vmem>>, vector<32x32xbf16>
    %cst_34 = arith.constant dense<0.000000e+00> : vector<8x32xf32>
    %90 = tpu.matmul %88, %89, %cst_34 {dimension_numbers = #tpu.dot_dimension_numbers<[1], [0], [0], [1], [0, 0, 1, 1], [], []>} : vector<8x32xbf16>, vector<32x32xbf16>, vector<8x32xf32> -> vector<8x32xf32>
    %c0_35 = arith.constant 0 : index
    %c0_36 = arith.constant 0 : index
    %c0_37 = arith.constant 0 : index
    %91 = vector.load %arg2[%c0_35, %c0_36, %c0_37] : memref<1x8x3xf32, #tpu.memory_space<vmem>>, vector<1x8x3xf32>
    %92 = vector.shape_cast %91 : vector<1x8x3xf32> to vector<8x3xf32>
    %c0_38 = arith.constant 0 : index
    %c0_39 = arith.constant 0 : index
    %93 = vector.load %arg10[%c0_38, %c0_39] : memref<3x32xf32, #tpu.memory_space<vmem>>, vector<3x32xf32>
    %94 = vector.extract_strided_slice %92 {offsets = [0, 0], sizes = [8, 1], strides = [1, 1]} : vector<8x3xf32> to vector<8x1xf32>
    %95 = vector.extract_strided_slice %93 {offsets = [0, 0], sizes = [1, 32], strides = [1, 1]} : vector<3x32xf32> to vector<1x32xf32>
    %96 = vector.broadcast %94 : vector<8x1xf32> to vector<8x32xf32>
    %97 = vector.broadcast %95 : vector<1x32xf32> to vector<8x32xf32>
    %98 = arith.mulf %96, %97 : vector<8x32xf32>
    %99 = vector.extract_strided_slice %92 {offsets = [0, 1], sizes = [8, 1], strides = [1, 1]} : vector<8x3xf32> to vector<8x1xf32>
    %100 = vector.extract_strided_slice %93 {offsets = [1, 0], sizes = [1, 32], strides = [1, 1]} : vector<3x32xf32> to vector<1x32xf32>
    %101 = vector.broadcast %99 : vector<8x1xf32> to vector<8x32xf32>
    %102 = vector.broadcast %100 : vector<1x32xf32> to vector<8x32xf32>
    %103 = arith.mulf %101, %102 : vector<8x32xf32>
    %104 = arith.addf %98, %103 : vector<8x32xf32>
    %105 = vector.extract_strided_slice %92 {offsets = [0, 2], sizes = [8, 1], strides = [1, 1]} : vector<8x3xf32> to vector<8x1xf32>
    %106 = vector.extract_strided_slice %93 {offsets = [2, 0], sizes = [1, 32], strides = [1, 1]} : vector<3x32xf32> to vector<1x32xf32>
    %107 = vector.broadcast %105 : vector<8x1xf32> to vector<8x32xf32>
    %108 = vector.broadcast %106 : vector<1x32xf32> to vector<8x32xf32>
    %109 = arith.mulf %107, %108 : vector<8x32xf32>
    %110 = arith.addf %104, %109 : vector<8x32xf32>
    %111 = arith.addf %90, %110 : vector<8x32xf32>
    %c0_40 = arith.constant 0 : index
    %c0_41 = arith.constant 0 : index
    %112 = vector.load %arg11[%c0_40, %c0_41] : memref<1x32xf32, #tpu.memory_space<vmem>>, vector<1x32xf32>
    %113 = vector.broadcast %112 : vector<1x32xf32> to vector<8x32xf32>
    %114 = arith.addf %111, %113 : vector<8x32xf32>
    %cst_42 = arith.constant 0.000000e+00 : f32
    %115 = vector.broadcast %cst_42 : f32 to vector<8x32xf32>
    %116 = arith.maximumf %114, %115 : vector<8x32xf32>
    %117 = vector.shape_cast %116 : vector<8x32xf32> to vector<1x8x32xf32>
    %118 = vector.extract_strided_slice %117 {offsets = [0, 0, 0], sizes = [1, 1, 32], strides = [1, 1, 1]} : vector<1x8x32xf32> to vector<1x1x32xf32>
    %119 = vector.shape_cast %118 : vector<1x1x32xf32> to vector<1x32xf32>
    %120 = vector.extract_strided_slice %117 {offsets = [0, 1, 0], sizes = [1, 1, 32], strides = [1, 1, 1]} : vector<1x8x32xf32> to vector<1x1x32xf32>
    %121 = vector.shape_cast %120 : vector<1x1x32xf32> to vector<1x32xf32>
    %122 = vector.extract_strided_slice %117 {offsets = [0, 2, 0], sizes = [1, 1, 32], strides = [1, 1, 1]} : vector<1x8x32xf32> to vector<1x1x32xf32>
    %123 = vector.shape_cast %122 : vector<1x1x32xf32> to vector<1x32xf32>
    %124 = vector.extract_strided_slice %117 {offsets = [0, 3, 0], sizes = [1, 1, 32], strides = [1, 1, 1]} : vector<1x8x32xf32> to vector<1x1x32xf32>
    %125 = vector.shape_cast %124 : vector<1x1x32xf32> to vector<1x32xf32>
    %126 = vector.extract_strided_slice %117 {offsets = [0, 4, 0], sizes = [1, 1, 32], strides = [1, 1, 1]} : vector<1x8x32xf32> to vector<1x1x32xf32>
    %127 = vector.shape_cast %126 : vector<1x1x32xf32> to vector<1x32xf32>
    %128 = vector.extract_strided_slice %117 {offsets = [0, 5, 0], sizes = [1, 1, 32], strides = [1, 1, 1]} : vector<1x8x32xf32> to vector<1x1x32xf32>
    %129 = vector.shape_cast %128 : vector<1x1x32xf32> to vector<1x32xf32>
    %130 = vector.extract_strided_slice %117 {offsets = [0, 6, 0], sizes = [1, 1, 32], strides = [1, 1, 1]} : vector<1x8x32xf32> to vector<1x1x32xf32>
    %131 = vector.shape_cast %130 : vector<1x1x32xf32> to vector<1x32xf32>
    %132 = vector.extract_strided_slice %117 {offsets = [0, 7, 0], sizes = [1, 1, 32], strides = [1, 1, 1]} : vector<1x8x32xf32> to vector<1x1x32xf32>
    %133 = vector.shape_cast %132 : vector<1x1x32xf32> to vector<1x32xf32>
    %134 = tpu.concatenate %119, %121, %123, %125, %127, %129, %131, %133 in 1 : vector<1x32xf32>, vector<1x32xf32>, vector<1x32xf32>, vector<1x32xf32>, vector<1x32xf32>, vector<1x32xf32>, vector<1x32xf32>, vector<1x32xf32> -> vector<1x256xf32>
    %c0_43 = arith.constant 0 : index
    %c0_44 = arith.constant 0 : index
    %c0_45 = arith.constant 0 : index
    %135 = vector.load %arg12[%c0_43, %c0_44, %c0_45] : memref<1x1x256xf32, #tpu.memory_space<vmem>>, vector<1x1x256xf32>
    %136 = vector.shape_cast %135 : vector<1x1x256xf32> to vector<1x256xf32>
    %137 = vector.shape_cast %134 : vector<1x256xf32> to vector<1x1x256xf32>
    tpu.vector_store %arg12[%c0_43, %c0_44, %c0_45], %137 {strides = array<i32>} : memref<1x1x256xf32, #tpu.memory_space<vmem>>, vector<1x1x256xf32>,
    return
  }
  func.func @transform_0(%arg0: i32) -> (i32, i32, i32) {
    %c0_i32 = arith.constant 0 : i32
    %c0_i32_0 = arith.constant 0 : i32
    %c0_i32_1 = arith.constant 0 : i32
    return %arg0, %c0_i32, %c0_i32_0 : i32, i32, i32
  }
  func.func @transform_1(%arg0: i32) -> (i32, i32, i32) {
    %c0_i32 = arith.constant 0 : i32
    %c0_i32_0 = arith.constant 0 : i32
    %c0_i32_1 = arith.constant 0 : i32
    return %arg0, %c0_i32, %c0_i32_0 : i32, i32, i32
  }
  func.func @transform_2(%arg0: i32) -> (i32, i32) {
    %c0_i32 = arith.constant 0 : i32
    %c0_i32_0 = arith.constant 0 : i32
    %c0_i32_1 = arith.constant 0 : i32
    return %c0_i32, %c0_i32_0 : i32, i32
  }
  func.func @transform_3(%arg0: i32) -> (i32, i32) {
    %c0_i32 = arith.constant 0 : i32
    %c0_i32_0 = arith.constant 0 : i32
    %c0_i32_1 = arith.constant 0 : i32
    return %c0_i32, %c0_i32_0 : i32, i32
  }
  func.func @transform_4(%arg0: i32) -> (i32, i32) {
    %c0_i32 = arith.constant 0 : i32
    %c0_i32_0 = arith.constant 0 : i32
    %c0_i32_1 = arith.constant 0 : i32
    return %c0_i32, %c0_i32_0 : i32, i32
  }
  func.func @transform_5(%arg0: i32) -> (i32, i32) {
    %c0_i32 = arith.constant 0 : i32
    %c0_i32_0 = arith.constant 0 : i32
    %c0_i32_1 = arith.constant 0 : i32
    return %c0_i32, %c0_i32_0 : i32, i32
  }
  func.func @transform_6(%arg0: i32) -> (i32, i32) {
    %c0_i32 = arith.constant 0 : i32
    %c0_i32_0 = arith.constant 0 : i32
    %c0_i32_1 = arith.constant 0 : i32
    return %c0_i32, %c0_i32_0 : i32, i32
  }
  func.func @transform_7(%arg0: i32) -> (i32, i32) {
    %c0_i32 = arith.constant 0 : i32
    %c0_i32_0 = arith.constant 0 : i32
    %c0_i32_1 = arith.constant 0 : i32
    return %c0_i32, %c0_i32_0 : i32, i32
  }
  func.func @transform_8(%arg0: i32) -> (i32, i32) {
    %c0_i32 = arith.constant 0 : i32
    %c0_i32_0 = arith.constant 0 : i32
    %c0_i32_1 = arith.constant 0 : i32
    return %c0_i32, %c0_i32_0 : i32, i32
  }
  func.func @transform_9(%arg0: i32) -> (i32, i32) {
    %c0_i32 = arith.constant 0 : i32
    %c0_i32_0 = arith.constant 0 : i32
    %c0_i32_1 = arith.constant 0 : i32
    return %c0_i32, %c0_i32_0 : i32, i32
  }
  func.func @transform_10(%arg0: i32) -> (i32, i32) {
    %c0_i32 = arith.constant 0 : i32
    %c0_i32_0 = arith.constant 0 : i32
    %c0_i32_1 = arith.constant 0 : i32
    return %c0_i32, %c0_i32_0 : i32, i32
  }
  func.func @transform_11(%arg0: i32) -> (i32, i32, i32) {
    %c0_i32 = arith.constant 0 : i32
    %c0_i32_0 = arith.constant 0 : i32
    %c0_i32_1 = arith.constant 0 : i32
    return %arg0, %c0_i32, %c0_i32_0 : i32, i32, i32
  }
}

</mosaic_0001>

<bundles_post_ra>
// kernel: tpu_custom_call.1
= control target key start
LH: loop header
LB: loop body
LE: loop exit
PB: predicated region body
PF: predicated region fallthrough
CT: control target
= control target key end

     0   :  { %s2693_s0 = inlined_call_operand.hbm [shape: bf16[2,8,16], index: 0, kind: input, shape index: {}]   ;;  %s2694_s1 = inlined_call_operand.hbm [shape: f32[2,8,3], index: 1, kind: input, shape index: {}]   ;;  %s2695_s2 = inlined_call_operand.hbm [shape: bf16[48,64], index: 2, kind: input, shape index: {}]   ;;  %s2696_s3 = inlined_call_operand.hbm [shape: f32[1,64], index: 3, kind: input, shape index: {}]   ;;  %s2697_s4 = inlined_call_operand.hbm [shape: bf16[192,64], index: 4, kind: input, shape index: {}]   ;;  %s2698_s5 = inlined_call_operand.hbm [shape: f32[1,64], index: 5, kind: input, shape index: {}]   ;;  %s2699_s6 = inlined_call_operand.hbm [shape: bf16[192,32], index: 6, kind: input, shape index: {}]   ;;  %s2700_s7 = inlined_call_operand.hbm [shape: f32[1,32], index: 7, kind: input, shape index: {}]   ;;  %s2701_s8 = inlined_call_operand.hbm [shape: bf16[32,32], index: 8, kind: input, shape index: {}]   ;;  %s2702_s9 = inlined_call_operand.hbm [shape: f32[3,32], index: 9, kind: input, shape index: {}]   ;;  %s2703_s10 = inlined_call_operand.hbm [shape: f32[1,32], index: 10, kind: input, shape index: {}]   ;;  %s2704_s11 = inlined_call_operand.hbm [shape: f32[2,1,256], index: 11, kind: output, shape index: {}]  }
   0x1   :  { %2714 = sst [smem:[#allocation30_spill]] %s2693_s0 }
   0x2   :  { %2715 = sst [smem:[#allocation31_spill]] %s2694_s1 }
   0x3   :  { %2716 = sst [smem:[#allocation32_spill]] %s2695_s2 }
   0x4   :  { %2717 = sst [smem:[#allocation33_spill]] %s2696_s3 }
   0x5   :  { %2718 = sst [smem:[#allocation34_spill]] %s2697_s4 }
   0x6   :  { %2719 = sst [smem:[#allocation35_spill]] %s2698_s5 }
   0x7   :  { %2720 = sst [smem:[#allocation36_spill]] %s2704_s11 }
   0x8   :  { %16 = vsyncpa [#allocation3], 0 }
   0x9   :  { %18 = vsyncpa [#allocation3 + $0x1], 0 }
   0xa   :  { %19 = vsyncpa [#allocation6], 0 }
   0xb   :  { %21 = vsyncpa [#allocation6 + $0x1], 0 }
   0xc   :  { %22 = vsyncpa [#allocation9], 0 }
   0xd   :  { %23 = vsyncpa [#allocation12], 0 }
   0xe   :  { %24 = vsyncpa [#allocation15], 0 }
   0xf   :  { %25 = vsyncpa [#allocation18], 0 }
  0x10   :  { %26 = vsyncpa [#allocation4], 0 }
  0x11   :  { %28 = vsyncpa [#allocation4 + $0x1], 0  ;;  %s2160_s17 = smov 0   ;;  %s2162_s18 = smov 0  }
  0x12   :  { %s2164_s19 = smov 0   ;;  %s2166_s20 = smov 0  }
  0x13 LB: > { %s2076_s21 = smov [#allocation7]   ;;  %s2181_s23 = sadd.s32 4294967295, %s2074_s20   ;;  %s2074_s20 = sphi %s2166_s20, %s2766_s20   ;;  %s2070_s19 = sphi %s2164_s19, %s2765_s19   ;;  %s2066_s18 = sphi %s2162_s18, %s2764_s18   ;;  %s2062_s17 = sphi %s2160_s17, %s2763_s17  }
  0x14   : > { %s318_s22 = sshll.u32 %s2076_s21, 4  ;;  %p1387_p0 = scmp.ge.s32.totalorder %s2074_s20, 1  ;;  %s2186_s22 = int_to_ptr.vmem [resolvable:$true] %s318_s22 }
  0x15   : > { %p2710_p1 = scmp.eq.s32.totalorder %s2181_s23, 0  ;;  %p306_p2 = scmp.lt.s32.totalorder %s2074_s20, 3 }
  0x16   : > { %s2077_s25 = smov [#allocation8]   ;;  %s2078_s28 = smov [#allocation11]  }
  0x17   : > { %p2188_p3 = pnand %p1387_p0, %p306_p2  ;;  %s332_s26 = sshll.u32 %s2077_s25, 4  ;;  %s2201_s26 = int_to_ptr.vmem [resolvable:$true] %s332_s26 }
  0x18   : > { %s356_s29 = sshll.u32 %s2078_s28, 4  ;;  %s2724_s2 = sld [smem:[#allocation32_spill]]  ;;  %s2203_s29 = int_to_ptr.vmem [resolvable:$true] %s356_s29 }
  0x19   : > { %s2721_s24 = scalar_select %p2188_p3, 1, 0 }
  0x1a   : > { %p1526_p5 = pneg %p2188_p3 }
  0x1b   : > { %2722 = sst [smem:[#allocation29_spill]] %s2721_s24 }
  0x1c   : > { %p2197_p6 = pnand %p1526_p5, %p2710_p1 }
  0x1e   : > { %s1672_s13 = scalar_lea.hbm %s2724_s2, 384  ;;  %p2213_p8 = pneg %p2197_p6 }
  0x1f   : > { %p1673_p7 = scmp.ne.s32.totalorder %s2724_s2, %s1672_s13  ;;  %p1679_p11 = scmp.lt.u32.totalorder %s1672_s13, %s2724_s2 }
  0x21   : > { %p1675_p9 = pnand %p2213_p8, %p1673_p7 }
  0x23   : > { %p1676_p10 = pneg %p1675_p9 }
  0x25   : > { %p1681_p12 = pnand %p1679_p11, %p1676_p10 }
  0x27   : > { %1684 = shalt.err (!%p1681_p12)
}
  0x28   : > { %s1685_s28 = scalar_lea.vmem %s2186_s22, 384  ;;  %p1693_p5 = scmp.lt.s32.totalorder %s2186_s22, %s2186_s22 }
  0x29   : > { %p1686_p13 = scmp.ne.s32.totalorder %s2186_s22, %s1685_s28  ;;  %p1694_p4 = scmp.lt.s32.totalorder %s1685_s28, %s1685_s28 }
  0x2b   : > { %p1688_p0 = pnand %p1686_p13, %p2213_p8  ;;  %p1695_p7 = por %p1694_p4, %p1693_p5 }
  0x2d   : > { %p1689_p2 = pneg %p1688_p0 }
  0x2f   : > { %p1696_p9 = pnand %p1695_p7, %p1689_p2 }
  0x31   : > { %1699 = shalt.err (!%p1696_p9)
}
  0x32   : > { %s2708_s30 = smov 64   ;;  %s2080_s12 = smov 4  }
  0x33   : > { %1529 = dma.hbm_to_vmem [thread:$0]  (!%p2197_p6), %s2724_s2, 384, %s2186_s22, [#allocation6], %s2708_s30, %s2708_s30, %s2080_s12  }
  0x34   : > { %s2726_s3 = sld [smem:[#allocation33_spill]] }
  0x3a   : > { %s1700_s25 = scalar_lea.hbm %s2726_s3, 16 }
  0x3b   : > { %p1701_p4 = scmp.ne.s32.totalorder %s2726_s3, %s1700_s25  ;;  %p1707_p12 = scmp.lt.u32.totalorder %s1700_s25, %s2726_s3 }
  0x3d   : > { %p1703_p10 = pnand %p1701_p4, %p2213_p8 }
  0x3f   : > { %p1704_p11 = pneg %p1703_p10 }
  0x41   : > { %p1709_p13 = pnand %p1707_p12, %p1704_p11 }
  0x43   : > { %1712 = shalt.err (!%p1709_p13)
}
  0x44   : > { %s1713_s22 = scalar_lea.vmem %s2201_s26, 16  ;;  %s1720_s11 = scalar_lea.vmem %s2201_s26, 32 }
  0x45   : > { %p1714_p0 = scmp.ne.s32.totalorder %s2201_s26, %s1713_s22  ;;  %p1721_p7 = scmp.lt.s32.totalorder %s2201_s26, %s2201_s26 }
  0x46   : > { %p1722_p9 = scmp.lt.s32.totalorder %s1720_s11, %s1713_s22 }
  0x47   : > { %p1716_p2 = pnand %p1714_p0, %p2213_p8 }
  0x48   : > { %p1723_p4 = por %p1722_p9, %p1721_p7 }
  0x49   : > { %p1717_p5 = pneg %p1716_p2 }
  0x4b   : > { %p1724_p10 = pnand %p1723_p4, %p1717_p5 }
  0x4d   : > { %1727 = shalt.err (!%p1724_p10)
}
  0x4e   : > { %1532 = dma.hbm_to_vmem [thread:$0]  (!%p2197_p6), %s2726_s3, 16, %s2201_s26, [#allocation9]  }
  0x4f   : > { %s2727_s5 = sld [smem:[#allocation35_spill]] }
  0x55   : > { %s1728_s15 = scalar_lea.hbm %s2727_s5, 16 }
  0x56   : > { %p1729_p11 = scmp.ne.s32.totalorder %s2727_s5, %s1728_s15  ;;  %p1735_p0 = scmp.lt.u32.totalorder %s1728_s15, %s2727_s5 }
  0x58   : > { %p1731_p12 = pnand %p1729_p11, %p2213_p8 }
  0x5a   : > { %p1732_p13 = pneg %p1731_p12 }
  0x5c   : > { %p1737_p2 = pnand %p1735_p0, %p1732_p13 }
  0x5e   : > { %1740 = shalt.err (!%p1737_p2)
}
  0x5f   : > { %s1741_s26 = scalar_lea.vmem %s2203_s29, 16  ;;  %s1748_s11 = scalar_lea.vmem %s2203_s29, 32 }
  0x60   : > { %p1742_p5 = scmp.ne.s32.totalorder %s2203_s29, %s1741_s26  ;;  %p1749_p4 = scmp.lt.s32.totalorder %s2203_s29, %s2203_s29 }
  0x61   : > { %p1750_p10 = scmp.lt.s32.totalorder %s1748_s11, %s1741_s26 }
  0x62   : > { %p1744_p7 = pnand %p1742_p5, %p2213_p8 }
  0x63   : > { %p1751_p11 = por %p1750_p10, %p1749_p4 }
  0x64   : > { %p1745_p9 = pneg %p1744_p7 }
  0x66   : > { %p1752_p12 = pnand %p1751_p11, %p1745_p9 }
  0x68   : > { %1755 = shalt.err (!%p1752_p12)
}
  0x69   : > { %1538 = dma.hbm_to_vmem [thread:$0]  (!%p2197_p6), %s2727_s5, 16, %s2203_s29, [#allocation12]  }
  0x6a   : > { %s2081_s13 = smov [#allocation14]   ;;  %s2082_s15 = smov [#allocation17]  }
  0x6b   : > { %s380_s14 = sshll.u32 %s2081_s13, 4  ;;  %s404_s21 = sshll.u32 %s2082_s15, 4  ;;  %s381_s14 = int_to_ptr.vmem [resolvable:$true] %s380_s14  ;;  %s405_s21 = int_to_ptr.vmem [resolvable:$true] %s404_s21 }
  0x6c   : > { %s1756_s22 = scalar_lea.hbm %s2700_s7, 16 }
  0x6d   : > { %p1757_p13 = scmp.ne.s32.totalorder %s2700_s7, %s1756_s22  ;;  %p1763_p5 = scmp.lt.u32.totalorder %s1756_s22, %s2700_s7 }
  0x6f   : > { %p1759_p0 = pnand %p1757_p13, %p2213_p8 }
  0x71   : > { %p1760_p2 = pneg %p1759_p0 }
  0x73   : > { %p1765_p7 = pnand %p1763_p5, %p1760_p2 }
  0x75   : > { %1768 = shalt.err (!%p1765_p7)
}
  0x76   : > { %s1769_s29 = scalar_lea.vmem %s381_s14, 16  ;;  %s1776_s24 = scalar_lea.vmem %s381_s14, 32 }
  0x77   : > { %p1770_p9 = scmp.ne.s32.totalorder %s381_s14, %s1769_s29  ;;  %p1777_p11 = scmp.lt.s32.totalorder %s381_s14, %s381_s14 }
  0x78   : > { %p1778_p12 = scmp.lt.s32.totalorder %s1776_s24, %s1769_s29 }
  0x79   : > { %p1772_p4 = pnand %p1770_p9, %p2213_p8 }
  0x7a   : > { %p1779_p1 = por %p1778_p12, %p1777_p11 }
  0x7b   : > { %p1773_p10 = pneg %p1772_p4 }
  0x7d   : > { %p1780_p3 = pnand %p1779_p1, %p1773_p10 }
  0x7f   : > { %1783 = shalt.err (!%p1780_p3)
}
  0x80   : > { %1544 = dma.hbm_to_vmem [thread:$0]  (!%p2197_p6), %s2700_s7, 16, %s381_s14, [#allocation15]  }
  0x81   : > { %s1784_s28 = scalar_lea.hbm %s2702_s9, 64 }
  0x82   : > { %p1785_p13 = scmp.ne.s32.totalorder %s2702_s9, %s1784_s28  ;;  %p1791_p3 = scmp.lt.u32.totalorder %s1784_s28, %s2702_s9 }
  0x84   : > { %p1787_p0 = pnand %p1785_p13, %p2213_p8 }
  0x86   : > { %p1788_p1 = pneg %p1787_p0 }
  0x88   : > { %p1793_p2 = pnand %p1791_p3, %p1788_p1 }
  0x8a   : > { %1796 = shalt.err (!%p1793_p2)
}
  0x8b   : > { %s1797_s29 = scalar_lea.vmem %s405_s21, 64  ;;  %p1805_p4 = scmp.lt.s32.totalorder %s405_s21, %s405_s21 }
  0x8c   : > { %p1798_p5 = scmp.ne.s32.totalorder %s405_s21, %s1797_s29  ;;  %p1806_p10 = scmp.lt.s32.totalorder %s1797_s29, %s1797_s29 }
  0x8e   : > { %p1800_p7 = pnand %p1798_p5, %p2213_p8  ;;  %p1807_p11 = por %p1806_p10, %p1805_p4 }
  0x90   : > { %p1801_p9 = pneg %p1800_p7 }
  0x92   : > { %p1808_p12 = pnand %p1807_p11, %p1801_p9 }
  0x94   : > { %1811 = shalt.err (!%p1808_p12)
}
  0x95   : > { %1550 = dma.hbm_to_vmem [thread:$0]  (!%p2197_p6), %s2702_s9, 64, %s405_s21, [#allocation18]  }
  0x96   : > { %s2083_s13 = smov [#allocation10]   ;;  %s2084_s30 = smov [#allocation13]  }
  0x97   : > { %s342_s15 = sshll.u32 %s2083_s13, 4  ;;  %s366_s25 = sshll.u32 %s2084_s30, 4  ;;  %s343_s15 = int_to_ptr.vmem [resolvable:$true] %s342_s15  ;;  %s367_s25 = int_to_ptr.vmem [resolvable:$true] %s366_s25 }
  0x98   : > { %s2728_s4 = sld [smem:[#allocation34_spill]] }
  0x9e   : > { %s1812_s26 = scalar_lea.hbm %s2728_s4, 1536 }
  0x9f   : > { %p1813_p13 = scmp.ne.s32.totalorder %s2728_s4, %s1812_s26  ;;  %p1819_p3 = scmp.lt.u32.totalorder %s1812_s26, %s2728_s4 }
  0xa1   : > { %p1815_p0 = pnand %p1813_p13, %p2213_p8 }
  0xa3   : > { %p1816_p1 = pneg %p1815_p0 }
  0xa5   : > { %p1821_p2 = pnand %p1819_p3, %p1816_p1 }
  0xa7   : > { %1824 = shalt.err (!%p1821_p2)
}
  0xa8   : > { %s1825_s21 = scalar_lea.vmem %s343_s15, 1536  ;;  %p1833_p4 = scmp.lt.s32.totalorder %s343_s15, %s343_s15 }
  0xa9   : > { %p1826_p5 = scmp.ne.s32.totalorder %s343_s15, %s1825_s21  ;;  %p1834_p10 = scmp.lt.s32.totalorder %s1825_s21, %s1825_s21 }
  0xab   : > { %p1828_p7 = pnand %p1826_p5, %p2213_p8  ;;  %p1835_p11 = por %p1834_p10, %p1833_p4 }
  0xad   : > { %p1829_p9 = pneg %p1828_p7 }
  0xaf   : > { %p1836_p12 = pnand %p1835_p11, %p1829_p9 }
  0xb1   : > { %1839 = shalt.err (!%p1836_p12)
}
  0xb2   : > { %s2729_s24 = smov 64   ;;  %s1840_s26 = scalar_lea.hbm %s2699_s6, 1536 }
  0xb3   : > { %1535 = dma.hbm_to_vmem [thread:$0]  (!%p2197_p6), %s2728_s4, 1536, %s343_s15, [#allocation9], %s2729_s24, %s2729_s24, %s2080_s12  }
  0xb4   : > { %p1841_p13 = scmp.ne.s32.totalorder %s2699_s6, %s1840_s26  ;;  %p1847_p3 = scmp.lt.u32.totalorder %s1840_s26, %s2699_s6 }
  0xb6   : > { %p1843_p0 = pnand %p1841_p13, %p2213_p8 }
  0xb8   : > { %p1844_p1 = pneg %p1843_p0 }
  0xba   : > { %p1849_p2 = pnand %p1847_p3, %p1844_p1 }
  0xbc   : > { %1852 = shalt.err (!%p1849_p2)
}
  0xbd   : > { %s1853_s21 = scalar_lea.vmem %s367_s25, 1536  ;;  %p1861_p4 = scmp.lt.s32.totalorder %s367_s25, %s367_s25 }
  0xbe   : > { %p1854_p5 = scmp.ne.s32.totalorder %s367_s25, %s1853_s21  ;;  %p1862_p10 = scmp.lt.s32.totalorder %s1853_s21, %s1853_s21 }
  0xc0   : > { %p1856_p7 = pnand %p1854_p5, %p2213_p8  ;;  %p1863_p11 = por %p1862_p10, %p1861_p4 }
  0xc2   : > { %p1857_p9 = pneg %p1856_p7 }
  0xc4   : > { %p1864_p12 = pnand %p1863_p11, %p1857_p9 }
  0xc6   : > { %1867 = shalt.err (!%p1864_p12)
}
  0xc7   : > { %1541 = dma.hbm_to_vmem [thread:$0]  (!%p2197_p6), %s2699_s6, 1536, %s367_s25, [#allocation12], %s2729_s24, %s2729_s24, %s2080_s12  }
  0xc8   : > { %s2085_s30 = smov [#allocation16]   ;;  %s2086_s22 = smov [#allocation19]  }
  0xc9   : > { %s390_s28 = sshll.u32 %s2085_s30, 4  ;;  %s415_s26 = sshll.u32 %s2086_s22, 4  ;;  %s391_s28 = int_to_ptr.vmem [resolvable:$true] %s390_s28  ;;  %s416_s26 = int_to_ptr.vmem [resolvable:$true] %s415_s26 }
  0xca   : > { %s1868_s29 = scalar_lea.hbm %s2701_s8, 256 }
  0xcb   : > { %p1869_p13 = scmp.ne.s32.totalorder %s2701_s8, %s1868_s29  ;;  %p1875_p3 = scmp.lt.u32.totalorder %s1868_s29, %s2701_s8 }
  0xcd   : > { %p1871_p0 = pnand %p1869_p13, %p2213_p8 }
  0xcf   : > { %p1872_p1 = pneg %p1871_p0 }
  0xd1   : > { %p1877_p2 = pnand %p1875_p3, %p1872_p1 }
  0xd3   : > { %1880 = shalt.err (!%p1877_p2)
}
  0xd4   : > { %s1881_s25 = scalar_lea.vmem %s391_s28, 256  ;;  %p1889_p4 = scmp.lt.s32.totalorder %s391_s28, %s391_s28 }
  0xd5   : > { %p1882_p5 = scmp.ne.s32.totalorder %s391_s28, %s1881_s25  ;;  %p1890_p10 = scmp.lt.s32.totalorder %s1881_s25, %s1881_s25 }
  0xd7   : > { %p1884_p7 = pnand %p1882_p5, %p2213_p8  ;;  %p1891_p11 = por %p1890_p10, %p1889_p4 }
  0xd9   : > { %p1885_p9 = pneg %p1884_p7 }
  0xdb   : > { %p1892_p12 = pnand %p1891_p11, %p1885_p9 }
  0xdd   : > { %1895 = shalt.err (!%p1892_p12)
}
  0xde   : > { %1547 = dma.hbm_to_vmem [thread:$0]  (!%p2197_p6), %s2701_s8, 256, %s391_s28, [#allocation15], %s2729_s24, %s2729_s24, %s2080_s12  }
  0xdf   : > { %s1896_s11 = scalar_lea.hbm %s2703_s10, 16 }
  0xe0   : > { %p1897_p13 = scmp.ne.s32.totalorder %s2703_s10, %s1896_s11  ;;  %p1903_p3 = scmp.lt.u32.totalorder %s1896_s11, %s2703_s10 }
  0xe2   : > { %p1899_p0 = pnand %p1897_p13, %p2213_p8 }
  0xe4   : > { %p1900_p1 = pneg %p1899_p0 }
  0xe6   : > { %p1905_p2 = pnand %p1903_p3, %p1900_p1 }
  0xe8   : > { %1908 = shalt.err (!%p1905_p2)
}
  0xe9   : > { %s1909_s15 = scalar_lea.vmem %s416_s26, 16  ;;  %s1916_s12 = scalar_lea.vmem %s416_s26, 32 }
  0xea   : > { %p1910_p5 = scmp.ne.s32.totalorder %s416_s26, %s1909_s15  ;;  %p1917_p4 = scmp.lt.s32.totalorder %s416_s26, %s416_s26 }
  0xeb   : > { %p1918_p10 = scmp.lt.s32.totalorder %s1916_s12, %s1909_s15 }
  0xec   : > { %p1912_p7 = pnand %p1910_p5, %p2213_p8 }
  0xed   : > { %p1919_p11 = por %p1918_p10, %p1917_p4 }
  0xee   : > { %p1913_p9 = pneg %p1912_p7 }
  0xf0   : > { %p1920_p12 = pnand %p1919_p11, %p1913_p9 }
  0xf2   : > { %1923 = shalt.err (!%p1920_p12)
}
  0xf3   : > { %1553 = dma.hbm_to_vmem [thread:$0]  (!%p2197_p6), %s2703_s10, 16, %s416_s26, [#allocation18]  }
  0xf4   : > { %s1386_s16 = sadd.s32 4294967294, %s2074_s20   ;;  %s2404_s27 = sadd.s32 1, %s2074_s20  }
  0xf5   : > { %s41_s25 = sadd.s32 1, %s2070_s19  ;;  %s38_s2 = ssub.s32 %s2074_s20, %s2404_s27 }
  0xf6   : > { %p48_p8 = scmp.ne.s32.totalorder %s2070_s19, %s2066_s18  ;;  %p39_p13 = scmp.eq.s32.totalorder %s38_s2, 0 }
  0xf7   : > { %p49_p0 = scmp.eq.s32.totalorder %s2074_s20, 0  ;;  %p54_p1 = scmp.ne.s32.totalorder %s2066_s18, %s2062_s17 }
  0xf8   : > { %p293_p3 = scmp.eq.s32.totalorder %s2181_s23, 1  ;;  %p2730_p5 = scmp.eq.s32.totalorder %s2181_s23, 0 }
  0xf9   : > { %s2416_s13 = scalar_select %p39_p13, %s2070_s19, %s41_s25  }
  0xfa   : > { %p50_p2 = por %p49_p0, %p48_p8  ;;  %p2420_p7 = por %p2730_p5, %p54_p1 }
  0xfb   : > { %p2424_p6 = por %p293_p3, %p48_p8  ;;  %p299_p9 = scmp.eq.s32.totalorder %s1386_s16, 1 }
  0xfc   : > { %s2731_s26 = scalar_select %p2420_p7, 1, 0 }
  0xfd   : > { %s2732_s30 = scalar_select %p2424_p6, 1, 0 }
  0xfe   : > { %p1574_p4 = scmp.lt.s32.totalorder %s2074_s20, 2  ;;  %s2430_s22 = sand.u32 1, %s2070_s19  }
  0xff   : > { %p2432_p10 = por %p299_p9, %p54_p1  ;;  %s1398_s1 = sshll.u32 %s2430_s22, 2 }
 0x100   : > { %s1399_s29 = sshll.u32 %s2074_s20, 6  ;;  %s2734_s0 = sld [smem:[#allocation30_spill]] }
 0x101   : > { %s2733_s11 = scalar_select %p2432_p10, 1, 0 }
 0x102   : > { %s430_s12 = scalar_lea.vmem [#allocation2], %s1398_s1  ;;  %p2443_p11 = pnand %p1574_p4, %p50_p2 }
 0x103   : > { %s437_s24 = sshll.u32 %s430_s12, 4  ;;  %s427_s25 = scalar_lea.sflag [#allocation3], %s2430_s22  ;;  %s2447_s24 = int_to_ptr.vmem [resolvable:$true] %s437_s24 }
 0x104   : > { %p1926_p8 = pneg %p2443_p11 }
 0x106   : > { %s2441_s15 = scalar_lea.hbm %s2734_s0, %s1399_s29  ;;  %s1929_s14 = scalar_lea.hbm %s2734_s0, 128 }
 0x107   : > { %s1924_s2 = scalar_lea.hbm %s2441_s15, 64  ;;  %p1930_p1 = scmp.lt.u32.totalorder %s2441_s15, %s2734_s0 }
 0x108   : > { %p1925_p12 = scmp.ne.s32.totalorder %s2441_s15, %s1924_s2  ;;  %p1931_p3 = scmp.lt.u32.totalorder %s1929_s14, %s1924_s2 }
 0x109   : > { %p1933_p5 = scmp.lt.u32.totalorder %s1924_s2, %s2441_s15 }
 0x10a   : > { %p1927_p13 = pnand %p1926_p8, %p1925_p12  ;;  %p1932_p2 = por %p1931_p3, %p1930_p1 }
 0x10c   : > { %p1928_p0 = pneg %p1927_p13  ;;  %p1934_p9 = por %p1933_p5, %p1932_p2 }
 0x10e   : > { %p1935_p4 = pnand %p1934_p9, %p1928_p0 }
 0x110   : > { %1938 = shalt.err (!%p1935_p4)
}
 0x111   : > { %s1939_s16 = scalar_lea.vmem %s2447_s24, 64  ;;  %s2087_s1 = smov [#allocation2]  }
 0x112   : > { %p1940_p12 = scmp.ne.s32.totalorder %s2447_s24, %s1939_s16  ;;  %s1944_s29 = sshll.u32 %s2087_s1, 4  ;;  %s1945_s29 = int_to_ptr.vmem [resolvable:$false] %s1944_s29 }
 0x113   : > { %s1946_s21 = scalar_lea.vmem %s1945_s29, 128  ;;  %p1947_p6 = scmp.lt.s32.totalorder %s2447_s24, %s1945_s29 }
 0x114   : > { %p1942_p13 = pnand %p1940_p12, %p1926_p8  ;;  %p1948_p1 = scmp.lt.s32.totalorder %s1946_s21, %s1939_s16 }
 0x116   : > { %p1943_p10 = pneg %p1942_p13  ;;  %p1949_p3 = por %p1948_p1, %p1947_p6 }
 0x118   : > { %p1950_p2 = pnand %p1949_p3, %p1943_p10 }
 0x11a   : > { %1953 = shalt.err (!%p1950_p2)
}
 0x11b   : > { %1557 = dma.hbm_to_vmem [thread:$0]  (!%p2443_p11), %s2441_s15, 64, %s2447_s24, %s427_s25  }
 0x11c   : > { %s1400_s2 = sshll.u32 %s2430_s22, 3  ;;  %s1401_s14 = sshll.u32 %s2074_s20, 7 }
 0x11d   : > { %s2736_s0 = sld [smem:[#allocation31_spill]]  ;;  %s448_s16 = scalar_lea.vmem [#allocation5], %s1400_s2 }
 0x11e   : > { %s455_s29 = sshll.u32 %s448_s16, 4  ;;  %s2737_s21 = sand.u32 1, %s2074_s20   ;;  %s456_s29 = int_to_ptr.vmem [resolvable:$true] %s455_s29 }
 0x11f   : > { %s445_s4 = scalar_lea.sflag [#allocation6], %s2737_s21 }
 0x123   : > { %s2481_s3 = scalar_lea.hbm %s2736_s0, %s1401_s14  ;;  %s1959_s24 = scalar_lea.hbm %s2736_s0, 256 }
 0x124   : > { %s1954_s5 = scalar_lea.hbm %s2481_s3, 128  ;;  %p1960_p5 = scmp.lt.u32.totalorder %s2481_s3, %s2736_s0 }
 0x125   : > { %p1955_p6 = scmp.ne.s32.totalorder %s2481_s3, %s1954_s5  ;;  %p1961_p9 = scmp.lt.u32.totalorder %s1959_s24, %s1954_s5 }
 0x126   : > { %p1963_p12 = scmp.lt.u32.totalorder %s1954_s5, %s2481_s3 }
 0x127   : > { %p1957_p10 = pnand %p1955_p6, %p1926_p8  ;;  %p1962_p4 = por %p1961_p9, %p1960_p5 }
 0x129   : > { %p1958_p0 = pneg %p1957_p10  ;;  %p1964_p13 = por %p1963_p12, %p1962_p4 }
 0x12b   : > { %p1965_p1 = pnand %p1964_p13, %p1958_p0 }
 0x12d   : > { %1968 = shalt.err (!%p1965_p1)
}
 0x12e   : > { %s1969_s2 = scalar_lea.vmem %s456_s29, 128  ;;  %s2088_s12 = smov [#allocation5]  }
 0x12f   : > { %p1970_p3 = scmp.ne.s32.totalorder %s456_s29, %s1969_s2  ;;  %s1974_s1 = sshll.u32 %s2088_s12, 4  ;;  %s1975_s1 = int_to_ptr.vmem [resolvable:$false] %s1974_s1 }
 0x130   : > { %s1976_s16 = scalar_lea.vmem %s1975_s1, 256  ;;  %p1977_p10 = scmp.lt.s32.totalorder %s456_s29, %s1975_s1 }
 0x131   : > { %p1972_p2 = pnand %p1970_p3, %p1926_p8  ;;  %p1978_p7 = scmp.lt.s32.totalorder %s1976_s16, %s1969_s2 }
 0x133   : > { %p1973_p6 = pneg %p1972_p2  ;;  %p1979_p5 = por %p1978_p7, %p1977_p10 }
 0x135   : > { %p1980_p9 = pnand %p1979_p5, %p1973_p6 }
 0x137   : > { %1983 = shalt.err (!%p1980_p9)
}
 0x138   : > { %1560 = dma.hbm_to_vmem [thread:$0]  (!%p2443_p11), %s2481_s3, 128, %s456_s29, %s445_s4  }
 0x139   : > { %s2738_s5 = sld [smem:[#allocation29_spill]] }
 0x13f   : > { %p2739_p0 = scmp.ne.s32.totalorder %s2738_s5, 0 }
 0x140   : > { %s2507_s21 = sand.u32 (!%p2739_p0), 1, %s2066_s18   ;;  %p2740_p8 = scmp.ne.s32.totalorder (!%p2739_p0), %s2731_s26, 0 }
 0x141   : > { %464 = sbr.rel (%p2739_p0) target bundleno = 1724 (0x6bc), region = 64  ;;  %s1403_s22 = sshll.u32 (!%p2739_p0), %s2507_s21, 2 }
 0x142   : > { %s467_s15 = scalar_lea.sflag (!%p2739_p0), [#allocation3], %s2507_s21  ;;  %s470_s24 = scalar_lea.vmem (!%p2739_p0), [#allocation2], %s1403_s22 }
 0x148   : > { %2029 = dma.done.wait (%p2740_p8), %s467_s15, 64  }
 0x149   : > { %2031 = vsyncadd (%p2740_p8), %s467_s15, 4294967232  ;;  %s475_s3 = sand.u32 1, %s2181_s23   ;;  %s1404_s4 = sshll.u32 %s2507_s21, 3 }
 0x14a   : > { %s476_s28 = scalar_lea.sflag [#allocation6], %s475_s3  ;;  %s2517_s29 = scalar_lea.vmem [#allocation5], %s1404_s4 }
 0x14b   : > { %2033 = dma.done.wait (%p2740_p8), %s476_s28, 128  }
 0x14c   : > { %2035 = vsyncadd (%p2740_p8), %s476_s28, 4294967168  ;;  %p2741_p7 = scmp.eq.s32.totalorder %s2181_s23, 0 }
 0x14e   : > { %2037 = dma.done.wait (%p2741_p7), [#allocation6], 384   ;;  %p2742_p11 = pmov %p2741_p7 }
 0x14f   : > { %p2743_p4 = pmov %p2741_p7 }
 0x150   : > { %2039 = vsyncadd (%p2742_p11), [#allocation6], 4294966912 }
 0x151   : > { %2041 = dma.done.wait (%p2743_p4), [#allocation9], 1552   ;;  %p2744_p12 = pmov %p2743_p4 }
 0x152   : > { %p2745_p13 = pmov %p2743_p4 }
 0x153   : > { %2043 = vsyncadd (%p2744_p12), [#allocation9], 4294965744 }
 0x154   : > { %2045 = dma.done.wait (%p2745_p13), [#allocation12], 1552   ;;  %p2746_p1 = pmov %p2743_p4 }
 0x156   : > { %2047 = vsyncadd (%p2746_p1), [#allocation12], 4294965744  ;;  %p2747_p3 = pmov %p2746_p1 }
 0x157   : > { %p2748_p2 = pmov %p2746_p1 }
 0x158   : > { %2049 = dma.done.wait (%p2747_p3), [#allocation15], 272  }
 0x159   : > { %2051 = vsyncadd (%p2748_p2), [#allocation15], 4294967024  ;;  %p2749_p6 = pmov %p2746_p1 }
 0x15a   : > { %p2750_p10 = pmov %p2746_p1 }
 0x15b   : > { %2053 = dma.done.wait (%p2749_p6), [#allocation18], 80  }
 0x15c   : > { %2055 = vsyncadd (%p2750_p10), [#allocation18], 4294967216  ;;  %v560_v0 = vlaneseq  ;;  %v2089_v2 = vmov 0.0   ;;  %vm2090_vm0 = vmmov 0   ;;  %vm599_vm1 = vcmask 1043456   ;;  %v1643_v5 = vld [vmem:[#allocation7] sm:$0xff]  }
 0x15d   : > { %1466 = vmatprep.subr.bf16.mxu0 %v2089_v2  ;;  %1472 = vmatprep.mubr.msk.bf16.mxu0 %vm2090_vm0, %v2089_v2  ;;  %vm600_vm2 = vsmask.f32 3328  ;;  %v1642_v4 = vld [vmem:[%s470_s24] ss:$0 sps:$4 sm:$0xff]   ;;  %s2091_s26 = smov 16   ;;  %v1645_v13 = vld [vmem:[#allocation7 + $0x10] sm:$0xff]  }
 0x15e   : > { %v2544_v1 = vshrl.u32 %v560_v0, 7  ;;  %607 = vrot.lane.b32.xlu0 %v1642_v4, %s2091_s26  ;;  %v584_v6 = vshll.u32 %v1642_v4, 16  ;;  %v581_v7 = vshrl.u32 %v1642_v4, 16  ;;  %vm2550_vm4 = vmand %vm599_vm1, %vm600_vm2  ;;  %1467 = vmatpush3.bf16.msra.mxu0 %v1643_v5  ;;  %v1644_v9 = vld [vmem:[#allocation7 + $0x8] sm:$0xff]   ;;  %s2092_s25 = smov 32   ;;  %vm588_vm6 = vcmask 1040384  }
 0x15f   : > { %1468 = vmatprep.subr.bf16.mxu0 %v2089_v2  ;;  %vm589_vm7 = vsmask.f32 256  ;;  %vm612_vm11 = vcmask 130048   ;;  %vm616_vm12 = vcmask 261120   ;;  %vm650_vm13 = vcmask 392192   ;;  %v1646_v26 = vld [vmem:[#allocation10] sm:$0xff]  }
 0x160   : > { %v566_v3 = vand.u32 7, %v2544_v1  ;;  %v596_v10 = vrot.slane %v584_v6, 1  ;;  %v583_v12 = vrot.slane %v581_v7, 7  ;;  %vm2565_vm9 = vmand %vm588_vm6, %vm589_vm7  ;;  %v2093_v27 = vmov 0   ;;  %v1647_v28 = vld [vmem:[#allocation10 + $0x8] sm:$0xff]   ;;  %v1648_v29 = vld [vmem:[#allocation10 + $0x10] sm:$0xff]  }
 0x161   : > { %824 = vmatprep.subr.bf16.mxu1 %v2093_v27  ;;  %1638 = vset.pattern.permute.xlu0 %v2093_v27  ;;  %v1649_v30 = vld [vmem:[#allocation10 + $0x18] sm:$0xff]   ;;  %v1650_v31 = vld [vmem:[#allocation10 + $0x20] sm:$0xff]   ;;  %v1651_v32 = vld [vmem:[#allocation10 + $0x28] sm:$0xff]   ;;  %s2094_s14 = smov 64   ;;  %vm713_vm14 = vcmask 523264   ;;  %v2095_v8 = vmov 1  }
 0x162   : > { %vm575_vm3 = vcmp.eq.s32.totalorder %v566_v3, 7  ;;  %v597_v14 = vor.u32 %v596_v10, %v581_v7  ;;  %v586_v15 = vor.u32 %v584_v6, %v583_v12  ;;  %1469 = vmatpush3.bf16.msra.mxu0 %v1644_v9  ;;  %vm574_vm8 = vcmp.eq.s32.totalorder %v566_v3, 0  ;;  %825 = vmatpush1.bf16.msra.mxu1 %v1646_v26  ;;  %v1652_v33 = vld [vmem:[#allocation10 + $0x30] sm:$0xff]   ;;  %v1653_v34 = vld [vmem:[#allocation10 + $0x38] sm:$0xff]   ;;  %v1654_v35 = vld [vmem:[#allocation10 + $0x40] sm:$0xff]   ;;  %s2097_s2 = smov 96  }
 0x163   : > { %vm2554_vm5 = vmpackc.low %vm575_vm3, %vm575_vm3  ;;  %1470 = vmatprep.subr.bf16.mxu0 %v2089_v2  ;;  %826 = vmatprep.subr.bf16.mxu1 %v2093_v27  ;;  %v1655_v36 = vld [vmem:[#allocation10 + $0x48] sm:$0xff]   ;;  %v1656_v37 = vld [vmem:[#allocation10 + $0x50] sm:$0xff]   ;;  %v2096_v11 = vmov 2   ;;  %s1414_s12 = sshll.u32 %s2507_s21, 1  ;;  %vm1165_vm15 = vcmask 785408   ;;  %s1458_s1 = sshll.u32 %s2181_s23, 5 }
 0x164   : > { %v602_v16 = vsel %vm2550_vm4, %v597_v14, 0  ;;  %vm2569_vm10 = vmpackc.low %vm574_vm8, %vm574_vm8  ;;  %v591_v21 = vsel %vm2565_vm9, 0, %v586_v15  ;;  %v1657_v38 = vld [vmem:[#allocation10 + $0x58] sm:$0xff]   ;;  %v1658_v59 = vld [vmem:[#allocation13] sm:$0xff]   ;;  %1639 = vset.pattern.permute.xlu1 %v2095_v8  ;;  %s558_s16 = scalar_lea.vmem [#allocation20], %s1414_s12  ;;  %s2759_s24 = sld [smem:[#allocation36_spill]] }
 0x165   : > { %v606_v17 = vsel %vm2554_vm5, 0, %v602_v16  ;;  %v595_v22 = vsel %vm2569_vm10, 0, %v591_v21  ;;  %v1416_v39 = vld [vmem:[#allocation8] ss:$0 sm:$0xff]  ;;  %v1659_v60 = vld [vmem:[#allocation13 + $0x8] sm:$0xff]   ;;  %v1660_v61 = vld [vmem:[#allocation13 + $0x10] sm:$0xff]  }
 0x166   : > { %610 = vrot.lane.b32.xlu0 %v606_v17, %s2092_s25  ;;  %1471 = vmatpush3.bf16.msra.mxu0 %v1645_v13  ;;  %v1661_v62 = vld [vmem:[#allocation13 + $0x18] sm:$0xff]   ;;  %v1662_v63 = vld [vmem:[#allocation13 + $0x20] sm:$0xff]   ;;  %v1663_v3 = vld [vmem:[#allocation13 + $0x28] sm:$0xff]   ;;  %s1208_s5 = sshll.u32 %s558_s16, 4  ;;  %s1194_s4 = scalar_lea.sflag [#allocation4], %s2507_s21  ;;  %s2651_s5 = int_to_ptr.vmem [resolvable:$true] %s1208_s5 }
 0x167   : > { %994 = vmatprep.subr.bf16.mxu0 %v2093_v27  ;;  %827 = vmatpush1.bf16.msra.mxu1 %v1647_v28  ;;  %v1664_v4 = vld [vmem:[#allocation13 + $0x30] sm:$0xff]   ;;  %v1665_v5 = vld [vmem:[#allocation13 + $0x38] sm:$0xff]   ;;  %v1666_v6 = vld [vmem:[#allocation13 + $0x40] sm:$0xff]   ;;  %s1984_s28 = scalar_lea.vmem %s2651_s5, 32  ;;  %p2760_p9 = scmp.ne.s32.totalorder %s2732_s30, 0 }
 0x168   : > { %828 = vmatprep.subr.bf16.mxu1 %v2093_v27  ;;  %v1667_v7 = vld [vmem:[#allocation13 + $0x48] sm:$0xff]   ;;  %v1668_v9 = vld [vmem:[#allocation13 + $0x50] sm:$0xff]   ;;  %v1669_v10 = vld [vmem:[#allocation13 + $0x58] sm:$0xff]   ;;  %p1985_p5 = scmp.ne.s32.totalorder %s2651_s5, %s1984_s28  ;;  %s2099_s23 = smov [#allocation20]  }
 0x169   : > { %v1670_v12 = vld [vmem:[#allocation16] sm:$0xff]   ;;  %v1421_v13 = vld [vmem:[#allocation11] ss:$0 sm:$0xff]  ;;  %v1435_v18 = vld [vmem:[#allocation14] ss:$0 sm:$0xff] }
 0x16a   : > { %s2649_s3 = scalar_lea.hbm %s2759_s24, %s1458_s1  ;;  %p1986_p0 = pnand %p1985_p5, %p2760_p9 }
 0x16b   : > { %829 = vmatpush1.bf16.msra.mxu1 %v1648_v29 }
 0x16c   : > { %830 = vmatprep.subr.bf16.mxu1 %v2093_v27  ;;  %p1987_p8 = pneg %p1986_p0 }
 0x16f   : > { %831 = vmatpush1.bf16.msra.mxu1 %v1649_v30 }
 0x170   : > { %832 = vmatprep.subr.bf16.mxu1 %v2093_v27 }
 0x173   : > { %833 = vmatpush1.bf16.msra.mxu1 %v1650_v31 }
 0x174   : > { %834 = vmatprep.subr.bf16.mxu1 %v2093_v27 }
 0x177   : > { %835 = vmatpush1.bf16.msra.mxu1 %v1651_v32 }
 0x178   : > { %836 = vmatprep.subr.bf16.mxu1 %v2093_v27 }
 0x17b   : > { %837 = vmatpush1.bf16.msra.mxu1 %v1652_v33 }
 0x17c   : > { %838 = vmatprep.subr.bf16.mxu1 %v2093_v27 }
 0x17f   : > { %839 = vmatpush1.bf16.msra.mxu1 %v1653_v34  ;;  %v1671_v34 = vld [vmem:[#allocation16 + $0x8] sm:$0xff]  }
 0x180   : > { %840 = vmatprep.subr.bf16.mxu1 %v2093_v27 }
 0x183   : > { %841 = vmatpush1.bf16.msra.mxu1 %v1654_v35  ;;  %v1040_v35 = vld [vmem:[%s2517_s29] sm:$0xff]  ;;  %s1988_s29 = sshll.u32 %s2099_s23, 4  ;;  %s1989_s29 = int_to_ptr.vmem [resolvable:$false] %s1988_s29 }
 0x184   : > { %842 = vmatprep.subr.bf16.mxu1 %v2093_v27  ;;  %1044 = vperm.xlu0 %1638, %v1040_v35   ;;  %s1990_s26 = scalar_lea.vmem %s1989_s29, 64  ;;  %p1991_p7 = scmp.lt.s32.totalorder %s2651_s5, %s1989_s29 }
 0x185   : > { %p1992_p11 = scmp.lt.s32.totalorder %s1990_s26, %s1984_s28 }
 0x187   : > { %843 = vmatpush1.bf16.msra.mxu1 %v1655_v36  ;;  %p1993_p4 = por %p1992_p11, %p1991_p7 }
 0x188   : > { %844 = vmatprep.subr.bf16.mxu1 %v2093_v27  ;;  %1641 = vset.pattern.permute.xlu0 %v2096_v11 }
 0x189   : > { %p1994_p12 = pnand %p1993_p4, %p1987_p8 }
 0x18b   : > { %845 = vmatpush1.bf16.msra.mxu1 %v1656_v37 }
 0x18c   : > { %846 = vmatprep.subr.bf16.mxu1 %v2093_v27 }
 0x18f   : > { %847 = vmatpush1.bf16.msra.mxu1 %v1657_v38 }
 0x190   : > { %1476 = vmatprep.subr.bf16.mxu1 %v2089_v2 }
 0x1d0   : > { %v608_v20 = vpop.permute.xlu0 %607 }
 0x1d1   : > { %v615_v23 = vsel %vm612_vm11, %v595_v22, %v608_v20 }
 0x1d8   : > { %v611_v24 = vpop.permute.xlu0 %610 }
 0x1d9   : > { %v618_v25 = vsel %vm616_vm12, %v615_v23, %v611_v24 }
 0x1da   : > { %1473 = vmatmul.mubr.msk.bf16.vlgmr.msra.gmra.mrb[0].mxu0 %vm650_vm13, %v618_v25 }
 0x1db   : > { %995 = vmatpush1.bf16.msra.mxu0 %v1658_v59 }
 0x1dc   : > { %996 = vmatprep.subr.bf16.mxu0 %v2093_v27 }
 0x1df   : > { %997 = vmatpush1.bf16.msra.mxu0 %v1659_v60 }
 0x1e0   : > { %998 = vmatprep.subr.bf16.mxu0 %v2093_v27 }
 0x1e3   : > { %999 = vmatpush1.bf16.msra.mxu0 %v1660_v61 }
 0x1e4   : > { %1000 = vmatprep.subr.bf16.mxu0 %v2093_v27 }
 0x1e7   : > { %1001 = vmatpush1.bf16.msra.mxu0 %v1661_v62 }
 0x1e8   : > { %1002 = vmatprep.subr.bf16.mxu0 %v2093_v27 }
 0x1eb   : > { %1003 = vmatpush1.bf16.msra.mxu0 %v1662_v63 }
 0x1ec   : > { %1004 = vmatprep.subr.bf16.mxu0 %v2093_v27 }
 0x1ef   : > { %1005 = vmatpush1.bf16.msra.mxu0 %v1663_v3 }
 0x1f0   : > { %1006 = vmatprep.subr.bf16.mxu0 %v2093_v27 }
 0x1f3   : > { %1007 = vmatpush1.bf16.msra.mxu0 %v1664_v4 }
 0x1f4   : > { %1008 = vmatprep.subr.bf16.mxu0 %v2093_v27 }
 0x1f7   : > { %1009 = vmatpush1.bf16.msra.mxu0 %v1665_v5 }
 0x1f8   : > { %1010 = vmatprep.subr.bf16.mxu0 %v2093_v27 }
 0x1fb   : > { %1011 = vmatpush1.bf16.msra.mxu0 %v1666_v6 }
 0x1fc   : > { %1012 = vmatprep.subr.bf16.mxu0 %v2093_v27 }
 0x1ff   : > { %1013 = vmatpush1.bf16.msra.mxu0 %v1667_v7 }
 0x200   : > { %1014 = vmatprep.subr.bf16.mxu0 %v2093_v27 }
 0x203   : > { %1015 = vmatpush1.bf16.msra.mxu0 %v1668_v9 }
 0x204   : > { %1016 = vmatprep.subr.bf16.mxu0 %v2093_v27 }
 0x207   : > { %1017 = vmatpush1.bf16.msra.mxu0 %v1669_v10 }
 0x2ad   : > { %v687_v40 = vpop.f32.mrb[0].mxu0 }
 0x2ae   : > { %v688_v41 = vadd.f32 %v1416_v39, %v687_v40  ;;  %v1474_v42 = vpop.f32.mrb[1].mxu0 }
 0x2af   : > { %v690_v43 = vpop.f32.mrb[2].mxu0  ;;  %v1058_v42 = vsub.s32 1, %v2544_v1 }
 0x2b0   : > { %v693_v44 = vmax.f32 %v688_v41, 0.0  ;;  %v1475_v45 = vpop.f32.mrb[3].mxu0  ;;  %v1049_v43 = vsub.s32 0, %v2544_v1 }
 0x2b2   : > { %v694_v46 = vpack.c.bf16 %v693_v44, %v693_v44  ;;  %v1041_v44 = vld [vmem:[#allocation17] sm:$0x7] }
 0x2b4   : > { %v699_v47 = vshll.u32 %v694_v46, 16  ;;  %711 = vrot.lane.b32.xlu1 %v694_v46, %s2094_s14  ;;  %v696_v48 = vshrl.u32 %v694_v46, 16  ;;  %v1059_v46 = vrot.slane %v1041_v44, %v1058_v42 }
 0x2b6   : > { %v698_v49 = vrot.slane %v696_v48, 7  ;;  %v705_v50 = vrot.slane %v699_v47, 1 }
 0x2b8   : > { %v706_v51 = vor.u32 %v705_v50, %v696_v48  ;;  %v701_v52 = vor.u32 %v699_v47, %v698_v49  ;;  %v1050_v47 = vrot.slane %v1041_v44, %v1049_v43  ;;  %v1068_v48 = vsub.s32 2, %v2544_v1  ;;  %v1045_v49 = vpop.permute.xlu0 %1044 }
 0x2ba   : > { %v708_v53 = vsel %vm2550_vm4, %v706_v51, 0  ;;  %v703_v55 = vsel %vm2565_vm9, 0, %v701_v52  ;;  %v1051_v51 = vmul.f32 %v1050_v47, %v1045_v49  ;;  %v1069_v52 = vrot.slane %v1041_v44, %v1068_v48 }
 0x2bb   : > { %v709_v54 = vsel %vm2554_vm5, 0, %v708_v53  ;;  %v704_v57 = vsel %vm2569_vm10, 0, %v703_v55 }
 0x2bc   : > { %1434 = vmatprep.mubr.msk.bf16.mxu1 %vm713_vm14, %v709_v54 }
 0x326   : > { %v712_v56 = vpop.permute.xlu1 %711 }
 0x327   : > { %v716_v58 = vsel %vm713_vm14, %v704_v57, %v712_v56 }
 0x328   : > { %857 = vmatmul.mubr.bf16.vlgmr.msra.gmra.mrb[0].mxu1 %v716_v58  ;;  %v1452_v58 = vld [vmem:[#allocation19] ss:$0 sm:$0xff] }
 0x329   : > { %1480 = vmatprep.mubr.msk.bf16.mxu1 %vm2090_vm0, %v2089_v2  ;;  %1477 = vmatpush3.bf16.msra.mxu1 %v1670_v12  ;;  %vm1190_vm0 = vcmp.lt.s32.totalorder %v560_v0, 256 }
 0x32a   : > { %1478 = vmatprep.subr.bf16.mxu1 %v2089_v2 }
 0x32d   : > { %1479 = vmatpush3.bf16.msra.mxu1 %v1671_v34 }
 0x3fb   : > { %v858_v14 = vpop.f32.mrb[0].mxu1 }
 0x3fc   : > { %v859_v15 = vadd.f32 %v1421_v13, %v858_v14  ;;  %v860_v16 = vpop.f32.mrb[1].mxu1  ;;  %v2098_v14 = vmov 1966171168  }
 0x3fd   : > { %v861_v17 = vpop.f32.mrb[2].mxu1 }
 0x3fe   : > { %v864_v20 = vmax.f32 %v859_v15, 0.0  ;;  %v862_v21 = vpop.f32.mrb[3].mxu1  ;;  %v1174_v15 = vunpack.c.l.s4 %v2098_v14 }
 0x400   : > { %v865_v22 = vpack.c.bf16 %v864_v20, %v864_v20  ;;  %v1175_v20 = vunpack.c.0.s8 %v1174_v15 }
 0x402   : > { %v867_v23 = vshrl.u32 %v865_v22, 16  ;;  %v870_v24 = vshll.u32 %v865_v22, 16  ;;  %882 = vrot.lane.b32.xlu1 %v865_v22, %s2094_s14 }
 0x404   : > { %v869_v25 = vrot.slane %v867_v23, 7  ;;  %v876_v26 = vrot.slane %v870_v24, 1 }
 0x406   : > { %v877_v27 = vor.u32 %v876_v26, %v867_v23  ;;  %v872_v28 = vor.u32 %v870_v24, %v869_v25  ;;  %1053 = vperm.xlu1 %1639, %v1040_v35  }
 0x408   : > { %v879_v29 = vsel %vm2550_vm4, %v877_v27, 0  ;;  %v874_v30 = vsel %vm2565_vm9, 0, %v872_v28  ;;  %v1178_v27 = vsub.s32 %v1175_v20, %v2544_v1 }
 0x409   : > { %v880_v2 = vsel %vm2554_vm5, 0, %v879_v29  ;;  %v875_v32 = vsel %vm2569_vm10, 0, %v874_v30 }
 0x40a   : > { %1448 = vmatprep.mubr.msk.bf16.mxu0 %vm713_vm14, %v880_v2  ;;  %1640 = vset.pattern.permute.xlu1 %v2096_v11 }
 0x40b   : > { %1063 = vperm.xlu1 %1640, %v1040_v35  }
 0x474   : > { %v883_v31 = vpop.permute.xlu1 %882 }
 0x475   : > { %v886_v33 = vsel %vm713_vm14, %v875_v32, %v883_v31 }
 0x476   : > { %1027 = vmatmul.mubr.bf16.vlgmr.msra.gmra.mrb[4].mxu0 %v886_v33 }
 0x485   : > { %v1054_v45 = vpop.permute.xlu1 %1053 }
 0x486   : > { %v1060_v50 = vmul.f32 %v1059_v46, %v1054_v45 }
 0x488   : > { %v1061_v54 = vadd.f32 %v1060_v50, %v1051_v51 }
 0x48a   : > { %v1064_v53 = vpop.permute.xlu1 %1063 }
 0x48b   : > { %v1070_v55 = vmul.f32 %v1069_v52, %v1064_v53 }
 0x48d   : > { %v1071_v56 = vadd.f32 %v1070_v55, %v1061_v54 }
 0x549   : > { %v1028_v36 = vpop.f32.mrb[4].mxu0 }
 0x54a   : > { %v1029_v37 = vadd.f32 %v1435_v18, %v1028_v36  ;;  %v1030_v38 = vpop.f32.mrb[5].mxu0 }
 0x54b   : > { %v1031_v19 = vpop.f32.mrb[6].mxu0 }
 0x54c   : > { %v1034_v39 = vmax.f32 %v1029_v37, 0.0  ;;  %v1032_v40 = vpop.f32.mrb[7].mxu0 }
 0x54e   : > { %v1035_v41 = vpack.c.bf16 %v1034_v39, %v1034_v39 }
 0x550   : > { %1481 = vmatmul.mubr.msk.bf16.vlgmr.msra.gmra.mrb[4].mxu1 %vm616_vm12, %v1035_v41 }
 0x623   : > { %v1121_v57 = vpop.f32.mrb[4].mxu1 }
 0x624   : > { %v1122_v59 = vadd.f32 %v1121_v57, %v1071_v56  ;;  %v1482_v60 = vpop.f32.mrb[5].mxu1 }
 0x625   : > { %v1124_v61 = vpop.f32.mrb[6].mxu1 }
 0x626   : > { %v1134_v62 = vadd.f32 %v1452_v58, %v1122_v59  ;;  %v1483_v63 = vpop.f32.mrb[7].mxu1 }
 0x628   : > { %v1135_v3 = vmax.f32 %v1134_v62, 0.0 }
 0x62a   : > { %v1151_v4 = vrot.slane %v1135_v3, 5  ;;  %v1137_v5 = vrot.slane %v1135_v3, 1  ;;  %v1155_v6 = vrot.slane %v1135_v3, 6  ;;  %v1141_v7 = vrot.slane %v1135_v3, 2 }
 0x62b   : > { %v1159_v9 = vrot.slane %v1135_v3, 7  ;;  %v1145_v10 = vrot.slane %v1135_v3, 3  ;;  %v1149_v21 = vrot.slane %v1135_v3, 4 }
 0x62c   : > { %1152 = vrot.lane.b32.xlu1 %v1151_v4, %s2092_s25  ;;  %1138 = vrot.lane.b32.xlu0 %v1137_v5, %s2092_s25 }
 0x630   : > { %1156 = vrot.lane.b32.xlu1 %v1155_v6, %s2094_s14  ;;  %1142 = vrot.lane.b32.xlu0 %v1141_v7, %s2094_s14 }
 0x634   : > { %1160 = vrot.lane.b32.xlu1 %v1159_v9, %s2097_s2  ;;  %1146 = vrot.lane.b32.xlu0 %v1145_v10, %s2097_s2 }
 0x69e   : > { %v1153_v12 = vpop.permute.xlu1 %1152  ;;  %v1139_v13 = vpop.permute.xlu0 %1138 }
 0x69f   : > { %v1167_v22 = vsel %vm616_vm12, %v1149_v21, %v1153_v12  ;;  %v1163_v23 = vsel %vm616_vm12, %v1135_v3, %v1139_v13 }
 0x6a2   : > { %v1157_v16 = vpop.permute.xlu1 %1156  ;;  %v1143_v17 = vpop.permute.xlu0 %1142 }
 0x6a3   : > { %v1168_v24 = vsel %vm713_vm14, %v1167_v22, %v1157_v16  ;;  %v1164_v25 = vsel %vm713_vm14, %v1163_v23, %v1143_v17 }
 0x6a6   : > { %v1161_v26 = vpop.permute.xlu1 %1160  ;;  %v1147_v28 = vpop.permute.xlu0 %1146 }
 0x6a7   : > { %v1169_v29 = vsel %vm1165_vm15, %v1168_v24, %v1161_v26  ;;  %v1166_v2 = vsel %vm1165_vm15, %v1164_v25, %v1147_v28 }
 0x6a8   : > { %v1172_v30 = vcombine.low %v1166_v2, %v1169_v29 }
 0x6aa   : > { %v1179_v31 = vrot.slane %v1172_v30, %v1178_v27 }
 0x6ac   : > { %v1186_v32 = vrot.slane %v1179_v31, %v1178_v27 }
 0x6ae   : > { %1192 = vst.msk [vmem:[%s558_s16] sm:$0x3] %vm1190_vm0, %v1186_v32 }
 0x6af   : > { %1997 = shalt.err (!%p1994_p12)
}
 0x6b0   : > { %s1998_s21 = scalar_lea.hbm %s2649_s3, 32  ;;  %s2002_s2 = scalar_lea.hbm %s2759_s24, 64 }
 0x6b1   : > { %p1999_p13 = scmp.ne.s32.totalorder %s2649_s3, %s1998_s21  ;;  %p2003_p2 = scmp.lt.u32.totalorder %s2649_s3, %s2759_s24 }
 0x6b2   : > { %p2004_p6 = scmp.lt.u32.totalorder %s2002_s2, %s1998_s21  ;;  %p2006_p5 = scmp.lt.u32.totalorder %s1998_s21, %s2649_s3 }
 0x6b3   : > { %p2000_p1 = pnand %p1999_p13, %p2760_p9 }
 0x6b4   : > { %p2005_p10 = por %p2004_p6, %p2003_p2 }
 0x6b5   : > { %p2001_p3 = pneg %p2000_p1 }
 0x6b6   : > { %p2007_p0 = por %p2006_p5, %p2005_p10 }
 0x6b8   : > { %p2008_p8 = pnand %p2007_p0, %p2001_p3 }
 0x6ba   : > { %2011 = shalt.err (!%p2008_p8)
}
 0x6bb   : > { %1524 = dma.vmem_to_hbm [thread:$0]  (%p2760_p9), %s2651_s5, 32, %s2649_s3, %s1194_s4  }
 0x6bc PF: > { %s1220_s16 = sand.u32 1, %s2062_s17   ;;  %p2761_p7 = scmp.ne.s32.totalorder %s2733_s11, 0 }
 0x6bd   : > { %p2762_p11 = scmp.ge.s32.totalorder %s2074_s20, 2  ;;  %s1221_s22 = scalar_lea.sflag [#allocation4], %s1220_s16 }
 0x6bf   : > { %p1562_p4 = pnand %p2762_p11, %p2761_p7 }
 0x6c1   : > { %2057 = dma.done.wait (!%p1562_p4), %s1221_s22, 32  }
 0x6c2   : > { %2059 = vsyncadd (!%p1562_p4), %s1221_s22, 4294967264  ;;  %p31_p12 = scmp.ge.s32.totalorder %s2404_s27, 4   ;;  %s2763_s17 = smov %s2066_s18 }
 0x6c3   : > { %s2764_s18 = smov %s2070_s19  ;;  %s2765_s19 = smov %s2416_s13 }
 0x6c4   : > { %s2766_s20 = smov %s2404_s27  ;;  %33 = sbr.rel (!%p31_p12) target bundleno = 19 (0x13), region = 158 }
 0x6cb   :  { %1226 = vsyncpa [#allocation3], 1 }
 0x6cc   :  { %1228 = vsyncpa [#allocation3 + $0x1], 1 }
 0x6cd   :  { %1229 = vsyncpa [#allocation6], 1 }
 0x6ce   :  { %1231 = vsyncpa [#allocation6 + $0x1], 1 }
 0x6cf   :  { %1232 = vsyncpa [#allocation9], 1 }
 0x6d0   :  { %1233 = vsyncpa [#allocation12], 1 }
 0x6d1   :  { %1234 = vsyncpa [#allocation15], 1 }
 0x6d2   :  { %1235 = vsyncpa [#allocation18], 1 }
 0x6d3   :  { %1236 = vsyncpa [#allocation4], 1 }
 0x6d4   :  { %1238 = vsyncpa [#allocation4 + $0x1], 1 }

</bundles_post_ra>
